<compile_context>
chip_gen: v5e
topology: v5e:2x2
jax: 0.10.0
libtpu: 0.0.40
codegen_flags: <defaults>
</compile_context>

<pallas_src>
import functools

import jax
import jax.numpy as jnp
import numpy as np
from jax.experimental import pallas as pl
from jax.experimental.pallas import tpu as pltpu

NUM_SITES = 8          # sys.argv[1] in the original script
BATCH = 2              # sys.argv[2] in the original script
HIDDEN = 128           # hidden_nodes
IN_CH = 2
LN_EPS = 1e-5          # nn.LayerNorm default eps
BATCH_BLOCK_ROWS = 128  # target (2*batch) rows per grid step once the caller batches up


def _mxu_is_256_wide():
    # v6e / v7x MXUs are 256-wide -> block-diagonal head fusion wins there;
    # v2-v5 use 128x128 tiles -> keep the two separate (H,H) head matmuls.
    try:
        kind = jax.devices()[0].device_kind.lower()
    except Exception:
        return True
    return not any(t in kind for t in ("v2", "v3", "v4", "v5"))


WIDE_HEADS = _mxu_is_256_wide()


def net_kernel(*refs, n_sites, bb, wide_heads):
    if wide_heads:
        (x_ref, win_ref, bin_ref, whh_ref, bhh_ref, lng_ref, lnb_ref,
         w1_ref, b1_ref, wbd2_ref, bbd2_ref,
         wfp_ref, wfa_ref, bfin_ref,
         out_ref, hid_scr, proj_scr) = refs
    else:
        (x_ref, win_ref, bin_ref, whh_ref, bhh_ref, lng_ref, lnb_ref,
         w1_ref, b1_ref, wp2_ref, bp2_ref, wa2_ref, ba2_ref,
         wfp_ref, wfa_ref, bfin_ref,
         out_ref, hid_scr, proj_scr) = refs

    H = lng_ref.shape[-1]
    x = x_ref[...]                                      # (N*BB, 2)
    lng = lng_ref[...]
    lnb = lnb_ref[...]

    def normalize(h_raw):
        # E[x^2] - mu^2: two independent lane reductions (overlap on XLU).
        mu = jnp.mean(h_raw, axis=-1, keepdims=True)
        ex2 = jnp.mean(h_raw * h_raw, axis=-1, keepdims=True)
        var = ex2 - mu * mu
        return (h_raw - mu) * jax.lax.rsqrt(var + LN_EPS)

    # ---- input projections hoisted out of the recurrence (no h dependence) ----
    # in_channels == 2: the 2 -> 2H projection is broadcast mul-adds (VPU) for all
    # sites at once.  The LN-folded hidden-path bias is added once for sites 1..N-1
    # so it disappears from the per-step serial chain.
    proj_scr[...] = (x[:, 0:1] * win_ref[0:1, :]
                     + x[:, 1:2] * win_ref[1:2, :] + bin_ref[...])
    if n_sites > 1:
        proj_scr[bb:n_sites * bb, :] = proj_scr[bb:n_sites * bb, :] + bhh_ref[...]

    # hid_scr holds the rolled+masked hiddens directly:
    #   rows [0, bb)            = 0                         (mask[0] == 0)
    #   rows [s*bb, (s+1)*bb)   = GRU hidden after site s-1 (roll by +1 along sites)
    hid_scr[0:bb, :] = jnp.zeros((bb, H), jnp.float32)

    # ---- GRU recurrence (serial over sites, fully unrolled) --------------------
    pj0 = proj_scr[0:bb, :]
    n = normalize(jnp.tanh(pj0[:, :H]) * jax.nn.sigmoid(pj0[:, H:]))
    h = n * lng + lnb                       # affine off the matmul chain (VPU)
    if n_sites > 1:
        hid_scr[bb:2 * bb, :] = h

    whh = whh_ref[...]                      # bf16 (H, 2H), LN-gamma folded
    for s in range(1, n_sites - 1):         # static full unroll; hidden of last site unused
        pj = proj_scr[s * bb:(s + 1) * bb, :]
        # single fused (H, 2H) bf16 hidden matmul on the critical path, f32 acc
        g = pj + jnp.dot(n.astype(jnp.bfloat16), whh,
                         preferred_element_type=jnp.float32)
        ig = jnp.tanh(g[:, :H])
        ug = jax.nn.sigmoid(g[:, H:])
        n = normalize(h * (1.0 - ug) + ig * ug)
        h = n * lng + lnb                   # overlaps next step's MXU work
        hid_scr[(s + 1) * bb:(s + 2) * bb, :] = h

    # ---- 1x1-conv heads: per-site channel matmuls over all sites at once -------
    hm = hid_scr[...]                                   # (N*BB, H)
    h1 = jnp.maximum(
        jnp.dot(hm, w1_ref[...], preferred_element_type=jnp.float32) + b1_ref[...],
        0.0)                                            # (N*BB, 2H) = [probs | ang]

    if wide_heads:
        # block-diagonal (2H,2H) second-layer fusion: fills a 256-wide MXU pass
        pha = jnp.maximum(
            jnp.dot(h1, wbd2_ref[...], preferred_element_type=jnp.float32)
            + bbd2_ref[...], 0.0)                       # [ph | ah]
        acc = (jnp.dot(pha[:, H:], wfa_ref[...], preferred_element_type=jnp.float32)
               + bfin_ref[...])
        acc = acc + jnp.dot(pha[:, :H], wfp_ref[...],
                            preferred_element_type=jnp.float32)
    else:
        # liveness-friendly ordering: finish the angular branch, drop it, then probs
        ah = jnp.maximum(
            jnp.dot(h1[:, H:], wa2_ref[...], preferred_element_type=jnp.float32)
            + ba2_ref[...], 0.0)
        acc = (jnp.dot(ah, wfa_ref[...], preferred_element_type=jnp.float32)
               + bfin_ref[...])
        ph = jnp.maximum(
            jnp.dot(h1[:, :H], wp2_ref[...], preferred_element_type=jnp.float32)
            + bp2_ref[...], 0.0)
        acc = acc + jnp.dot(ph, wfp_ref[...], preferred_element_type=jnp.float32)

    # acc columns: [d = logit0-logit1, sin0, sin1, cos0, cos1, 0, 0, 0]
    # softmax over 2 channels folded to sigmoid(d); exact, underflow-safe log-prob:
    #   log(sum_c probs*x) = -(x0*softplus(-d) + x1*softplus(d)) for one-hot rows.
    d = acc[:, 0:1]
    sp_pos = jnp.maximum(d, 0.0) + jnp.log(1.0 + jnp.exp(-jnp.abs(d)))
    sp_neg = sp_pos - d                                 # softplus(-d) identity
    logp = -(x[:, 0:1] * sp_neg + x[:, 1:2] * sp_pos)

    # single lane-packed output slab: [logp, sin0, sin1, cos0, cos1, 0, 0, 0]
    col = jax.lax.broadcasted_iota(jnp.int32, acc.shape, 1)
    out_ref[...] = jnp.where(col == 0, logp, acc)


@jax.jit
def net_forward(inp, params):
    # inp: (B, 2, N) float32  -- PyTorch NCW layout
    (wii, bii, wih, bih, wui, bui, wuh, buh, lng, lnb,
     wp1, bp1, wp2, bp2, wa1, ba1, wa2, ba2,
     wpr, bpr, wsin, bsin, wcos, bcos) = params

    B, _, N = inp.shape
    H = HIDDEN
    B2 = 2 * B
    # batch-block size: fill M=128 per grid step when the caller batches enough
    bb = BATCH_BLOCK_ROWS if B2 >= BATCH_BLOCK_ROWS else max(8, ((B2 + 7) // 8) * 8)
    n_blocks = (B2 + bb - 1) // bb
    B2P = n_blocks * bb
    rows = N * bb

    inp_cat = jnp.concatenate([inp, inp[:, :, ::-1]], axis=0)      # cat(inp, inp.flip(2))
    x_k = jnp.transpose(inp_cat, (2, 0, 1)).astype(jnp.float32)    # (N, 2B, 2) site-major
    # pad with ones: padded rows stay finite through the heads, sliced off below
    x_pad = jnp.pad(x_k, ((0, 0), (0, B2P - B2), (0, 0)), constant_values=1.0)
    # (block, site, row-in-block, channel) so each grid step gets a contiguous slab
    x_blk = (x_pad.reshape(N, n_blocks, bb, 2)
                  .transpose(1, 0, 2, 3).reshape(n_blocks * rows, 2))

    # ---- fuse weights once in the (jitted) glue --------------------------------
    w_in = jnp.concatenate([wii, wui], axis=1)            # (2, 2H)
    b_in = jnp.concatenate([bii, bui], axis=1)            # (1, 2H)
    w_hh = jnp.concatenate([wih, wuh], axis=1)            # (H, 2H)
    b_hh = jnp.concatenate([bih, buh], axis=1)            # (1, 2H)
    # LayerNorm affine folded into the recurrence weights (h = n*gamma + beta):
    whh_s = (lng.reshape(H, 1) * w_hh).astype(jnp.bfloat16)   # bf16 RHS, f32 MXU acc
    bhh_s = b_hh + lnb @ w_hh
    w1 = jnp.concatenate([wp1, wa1], axis=1)               # (H, 2H)
    b1 = jnp.concatenate([bp1, ba1], axis=1)               # (1, 2H)
    # fused final projections (lane-packed 8-wide):
    #   col 0 = probs logit diff (softmax -> sigmoid fold), cols 1..2 = sin, 3..4 = cos
    wfp = jnp.zeros((H, 8), jnp.float32).at[:, 0:1].set(wpr[:, 0:1] - wpr[:, 1:2])
    wfa = (jnp.zeros((H, 8), jnp.float32).at[:, 1:3].set(wsin).at[:, 3:5].set(wcos))
    bfin = (jnp.zeros((1, 8), jnp.float32)
            .at[:, 0:1].set(bpr[:, 0:1] - bpr[:, 1:2])
            .at[:, 1:3].set(bsin).at[:, 3:5].set(bcos))

    if WIDE_HEADS:
        wbd2 = (jnp.zeros((2 * H, 2 * H), jnp.float32)
                .at[:H, :H].set(wp2).at[H:, H:].set(wa2))
        bbd2 = jnp.concatenate([bp2, ba2], axis=1)
        args = (x_blk, w_in, b_in, whh_s, bhh_s, lng, lnb, w1, b1,
                wbd2, bbd2, wfp, wfa, bfin)
    else:
        args = (x_blk, w_in, b_in, whh_s, bhh_s, lng, lnb, w1, b1,
                wp2, bp2, wa2, ba2, wfp, wfa, bfin)

    def _full(a):
        # whole-weight block, constant index -> resident across grid iterations
        return pl.BlockSpec(a.shape, lambda i: (0, 0))

    in_specs = [pl.BlockSpec((rows, 2), lambda i: (i, 0))] + [_full(a) for a in args[1:]]
    out_spec = pl.BlockSpec((rows, 8), lambda i: (i, 0))

    # TODO(synk): in the autoregressive sampling loop, batch many candidate
    # configurations per call (B >= 64 -> 128-row MXU tiles, grid > 1 for v7x's
    # two TensorCores) and amortize the ~0.6 MiB weight upload across calls.
    slab = pl.pallas_call(
        functools.partial(net_kernel, n_sites=N, bb=bb, wide_heads=WIDE_HEADS),
        out_shape=jax.ShapeDtypeStruct((n_blocks * rows, 8), jnp.float32),
        grid=(n_blocks,),
        in_specs=in_specs,
        out_specs=out_spec,
        scratch_shapes=[pltpu.VMEM((rows, HIDDEN), jnp.float32),
                        pltpu.VMEM((rows, 2 * HIDDEN), jnp.float32)],
        compiler_params=pltpu.CompilerParams(dimension_semantics=("parallel",)),
    )(*args)

    # ---- tiny symmetrization tail kept in plain JAX glue ------------------------
    # TODO(synk): atan2 has no guaranteed Mosaic lowering; kept outside the kernel.
    slab = (slab.reshape(n_blocks, N, bb, 8).transpose(1, 0, 2, 3)
                .reshape(N, B2P, 8)[:, :B2, :])                      # (N, 2B, 8)

    prob_wf = jnp.sum(slab[..., 0], axis=0)                          # (2B,)
    phase = jnp.arctan2(slab[..., 1:3], slab[..., 3:5])              # (N, 2B, 2)
    phase_wf = jnp.sum(phase * x_k, axis=(0, 2))                     # (2B,)

    log_sq = prob_wf.reshape(2, B)
    phs = phase_wf.reshape(2, B)
    mx = jnp.max(log_sq, axis=0, keepdims=True)
    w = jnp.exp(log_sq - mx)
    log_wf = jnp.squeeze(
        0.5 * jnp.log(jnp.mean(w, axis=0, keepdims=True)) + 0.5 * mx, axis=0)
    phase_out = jnp.arctan2(jnp.sum(w * jnp.sin(phs), axis=0),
                            jnp.sum(w * jnp.cos(phs), axis=0))
    return log_wf, phase_out


def init_params(key):
    # Deterministic synthetic init (PyTorch-style U(-1/sqrt(fan_in), +...)).
    # All weights stored pre-transposed as (fan_in, fan_out); biases as (1, fan_out).
    ks = jax.random.split(key, 11)

    def linear(k, fan_in, fan_out):
        bound = 1.0 / np.sqrt(fan_in)
        kw, kb = jax.random.split(k)
        w = jax.random.uniform(kw, (fan_in, fan_out), jnp.float32, -bound, bound)
        b = jax.random.uniform(kb, (1, fan_out), jnp.float32, -bound, bound)
        return w, b

    wii, bii = linear(ks[0], IN_CH, HIDDEN)      # gru.input_input
    wih, bih = linear(ks[1], HIDDEN, HIDDEN)     # gru.input_hidden
    wui, bui = linear(ks[2], IN_CH, HIDDEN)      # gru.update_input
    wuh, buh = linear(ks[3], HIDDEN, HIDDEN)     # gru.update_hidden
    lng = jnp.ones((1, HIDDEN), jnp.float32)     # gru.layer_norm.weight
    lnb = jnp.zeros((1, HIDDEN), jnp.float32)    # gru.layer_norm.bias
    wp1, bp1 = linear(ks[4], HIDDEN, HIDDEN)     # probs_hid1 (1x1 conv)
    wp2, bp2 = linear(ks[5], HIDDEN, HIDDEN)     # probs_hid2
    wa1, ba1 = linear(ks[6], HIDDEN, HIDDEN)     # ang_hid1
    wa2, ba2 = linear(ks[7], HIDDEN, HIDDEN)     # ang_hid2
    wpr, bpr = linear(ks[8], HIDDEN, 2)          # probs
    wsin, bsin = linear(ks[9], HIDDEN, 2)        # sin
    wcos, bcos = linear(ks[10], HIDDEN, 2)       # cos
    return (wii, bii, wih, bih, wui, bui, wuh, buh, lng, lnb,
            wp1, bp1, wp2, bp2, wa1, ba1, wa2, ba2,
            wpr, bpr, wsin, bsin, wcos, bcos)


if __name__ == "__main__":
    key = jax.random.PRNGKey(0)
    kp, kx = jax.random.split(key)
    params = init_params(kp)

    # One-hot spin configurations, matching what Net.sample() would feed forward().
    spins = jax.random.bernoulli(kx, 0.5, (BATCH, NUM_SITES)).astype(jnp.float32)
    inp = jnp.stack([1.0 - spins, spins], axis=1)   # (B, 2, N)  NCW

    log_wf, phase_wf = net_forward(inp, params)
    jax.block_until_ready((log_wf, phase_wf))

    assert log_wf.shape == (BATCH,) and phase_wf.shape == (BATCH,)
    assert bool(jnp.all(jnp.isfinite(log_wf))) and bool(jnp.all(jnp.isfinite(phase_wf)))
    print("KERNEL_OK")
</pallas_src>

<mosaic_0001>
module attributes {stable_mosaic.version = 11 : i64} {
  func.func @net_kernel(%arg0: i32, %arg1: memref<64x2xf32, #tpu.memory_space<vmem>>, %arg2: memref<2x256xf32, #tpu.memory_space<vmem>>, %arg3: memref<1x256xf32, #tpu.memory_space<vmem>>, %arg4: memref<128x256xbf16, #tpu.memory_space<vmem>>, %arg5: memref<1x256xf32, #tpu.memory_space<vmem>>, %arg6: memref<1x128xf32, #tpu.memory_space<vmem>>, %arg7: memref<1x128xf32, #tpu.memory_space<vmem>>, %arg8: memref<128x256xf32, #tpu.memory_space<vmem>>, %arg9: memref<1x256xf32, #tpu.memory_space<vmem>>, %arg10: memref<256x256xf32, #tpu.memory_space<vmem>>, %arg11: memref<1x256xf32, #tpu.memory_space<vmem>>, %arg12: memref<128x8xf32, #tpu.memory_space<vmem>>, %arg13: memref<128x8xf32, #tpu.memory_space<vmem>>, %arg14: memref<1x8xf32, #tpu.memory_space<vmem>>, %arg15: memref<64x8xf32, #tpu.memory_space<vmem>>, %arg16: memref<64x128xf32, #tpu.memory_space<vmem>>, %arg17: memref<64x256xf32, #tpu.memory_space<vmem>>) attributes {dimension_semantics = [#tpu.dimension_semantics<parallel>], iteration_bounds = array<i64: 1>, scalar_prefetch = 0 : i64, scratch_operands = 2 : i64, tpu.core_type = #tpu.core_type<tc>, window_params = [{transform_indices = @transform_0, window_bounds = array<i64: 64, 2>}, {pipeline_mode = #tpu.pipeline_mode<synchronous>, transform_indices = @transform_1, window_bounds = array<i64: 2, 256>}, {pipeline_mode = #tpu.pipeline_mode<synchronous>, transform_indices = @transform_2, window_bounds = array<i64: 1, 256>}, {pipeline_mode = #tpu.pipeline_mode<synchronous>, transform_indices = @transform_3, window_bounds = array<i64: 128, 256>}, {pipeline_mode = #tpu.pipeline_mode<synchronous>, transform_indices = @transform_4, window_bounds = array<i64: 1, 256>}, {pipeline_mode = #tpu.pipeline_mode<synchronous>, transform_indices = @transform_5, window_bounds = array<i64: 1, 128>}, {pipeline_mode = #tpu.pipeline_mode<synchronous>, transform_indices = @transform_6, window_bounds = array<i64: 1, 128>}, {pipeline_mode = #tpu.pipeline_mode<synchronous>, transform_indices = @transform_7, window_bounds = array<i64: 128, 256>}, {pipeline_mode = #tpu.pipeline_mode<synchronous>, transform_indices = @transform_8, window_bounds = array<i64: 1, 256>}, {pipeline_mode = #tpu.pipeline_mode<synchronous>, transform_indices = @transform_9, window_bounds = array<i64: 256, 256>}, {pipeline_mode = #tpu.pipeline_mode<synchronous>, transform_indices = @transform_10, window_bounds = array<i64: 1, 256>}, {pipeline_mode = #tpu.pipeline_mode<synchronous>, transform_indices = @transform_11, window_bounds = array<i64: 128, 8>}, {pipeline_mode = #tpu.pipeline_mode<synchronous>, transform_indices = @transform_12, window_bounds = array<i64: 128, 8>}, {pipeline_mode = #tpu.pipeline_mode<synchronous>, transform_indices = @transform_13, window_bounds = array<i64: 1, 8>}, {transform_indices = @transform_14, window_bounds = array<i64: 64, 8>}]} {
    %c0 = arith.constant 0 : index
    %c0_0 = arith.constant 0 : index
    %0 = vector.load %arg1[%c0, %c0_0] : memref<64x2xf32, #tpu.memory_space<vmem>>, vector<64x2xf32>
    %c0_1 = arith.constant 0 : index
    %c0_2 = arith.constant 0 : index
    %1 = vector.load %arg6[%c0_1, %c0_2] : memref<1x128xf32, #tpu.memory_space<vmem>>, vector<1x128xf32>
    %c0_3 = arith.constant 0 : index
    %c0_4 = arith.constant 0 : index
    %2 = vector.load %arg7[%c0_3, %c0_4] : memref<1x128xf32, #tpu.memory_space<vmem>>, vector<1x128xf32>
    %3 = vector.extract_strided_slice %0 {offsets = [0, 0], sizes = [64, 1], strides = [1, 1]} : vector<64x2xf32> to vector<64x1xf32>
    %c0_5 = arith.constant 0 : index
    %c0_6 = arith.constant 0 : index
    %4 = vector.load %arg2[%c0_5, %c0_6] : memref<2x256xf32, #tpu.memory_space<vmem>>, vector<1x256xf32>
    %5 = vector.broadcast %3 : vector<64x1xf32> to vector<64x256xf32>
    %6 = vector.broadcast %4 : vector<1x256xf32> to vector<64x256xf32>
    %7 = arith.mulf %5, %6 : vector<64x256xf32>
    %8 = vector.extract_strided_slice %0 {offsets = [0, 1], sizes = [64, 1], strides = [1, 1]} : vector<64x2xf32> to vector<64x1xf32>
    %c1 = arith.constant 1 : index
    %c0_7 = arith.constant 0 : index
    %9 = vector.load %arg2[%c1, %c0_7] : memref<2x256xf32, #tpu.memory_space<vmem>>, vector<1x256xf32>
    %10 = vector.broadcast %8 : vector<64x1xf32> to vector<64x256xf32>
    %11 = vector.broadcast %9 : vector<1x256xf32> to vector<64x256xf32>
    %12 = arith.mulf %10, %11 : vector<64x256xf32>
    %13 = arith.addf %7, %12 : vector<64x256xf32>
    %c0_8 = arith.constant 0 : index
    %c0_9 = arith.constant 0 : index
    %14 = vector.load %arg3[%c0_8, %c0_9] : memref<1x256xf32, #tpu.memory_space<vmem>>, vector<1x256xf32>
    %15 = vector.broadcast %14 : vector<1x256xf32> to vector<64x256xf32>
    %16 = arith.addf %13, %15 : vector<64x256xf32>
    %c0_10 = arith.constant 0 : index
    %c0_11 = arith.constant 0 : index
    %17 = vector.load %arg17[%c0_10, %c0_11] : memref<64x256xf32, #tpu.memory_space<vmem>>, vector<64x256xf32>
    tpu.vector_store %arg17[%c0_10, %c0_11], %16 {strides = array<i32>} : memref<64x256xf32, #tpu.memory_space<vmem>>, vector<64x256xf32>,
    %c8 = arith.constant 8 : index
    %c0_12 = arith.constant 0 : index
    %18 = vector.load %arg17[%c8, %c0_12] : memref<64x256xf32, #tpu.memory_space<vmem>>, vector<56x256xf32>
    %c0_13 = arith.constant 0 : index
    %c0_14 = arith.constant 0 : index
    %19 = vector.load %arg5[%c0_13, %c0_14] : memref<1x256xf32, #tpu.memory_space<vmem>>, vector<1x256xf32>
    %20 = vector.broadcast %19 : vector<1x256xf32> to vector<56x256xf32>
    %21 = arith.addf %18, %20 : vector<56x256xf32>
    %c8_15 = arith.constant 8 : index
    %c0_16 = arith.constant 0 : index
    %22 = vector.load %arg17[%c8_15, %c0_16] : memref<64x256xf32, #tpu.memory_space<vmem>>, vector<56x256xf32>
    tpu.vector_store %arg17[%c8_15, %c0_16], %21 {strides = array<i32>} : memref<64x256xf32, #tpu.memory_space<vmem>>, vector<56x256xf32>,
    %cst = arith.constant 0.000000e+00 : f32
    %23 = vector.broadcast %cst : f32 to vector<8x128xf32>
    %c0_17 = arith.constant 0 : index
    %c0_18 = arith.constant 0 : index
    %24 = vector.load %arg16[%c0_17, %c0_18] : memref<64x128xf32, #tpu.memory_space<vmem>>, vector<8x128xf32>
    tpu.vector_store %arg16[%c0_17, %c0_18], %23 {strides = array<i32>} : memref<64x128xf32, #tpu.memory_space<vmem>>, vector<8x128xf32>,
    %c0_19 = arith.constant 0 : index
    %c0_20 = arith.constant 0 : index
    %25 = vector.load %arg17[%c0_19, %c0_20] : memref<64x256xf32, #tpu.memory_space<vmem>>, vector<8x256xf32>
    %26 = vector.extract_strided_slice %25 {offsets = [0, 0], sizes = [8, 128], strides = [1, 1]} : vector<8x256xf32> to vector<8x128xf32>
    %27 = math.tanh %26 : vector<8x128xf32>
    %28 = vector.extract_strided_slice %25 {offsets = [0, 128], sizes = [8, 128], strides = [1, 1]} : vector<8x256xf32> to vector<8x128xf32>
    %29 = arith.negf %28 : vector<8x128xf32>
    %30 = math.exp %29 : vector<8x128xf32>
    %cst_21 = arith.constant 1.000000e+00 : f32
    %31 = vector.broadcast %cst_21 : f32 to vector<8x128xf32>
    %32 = arith.addf %31, %30 : vector<8x128xf32>
    %33 = arith.divf %31, %32 : vector<8x128xf32>
    %34 = arith.mulf %27, %33 : vector<8x128xf32>
    %cst_22 = arith.constant dense<0.000000e+00> : vector<8xf32>
    %35 = vector.multi_reduction <add>, %34, %cst_22 [1] : vector<8x128xf32> to vector<8xf32>
    %36 = vector.shape_cast %35 : vector<8xf32> to vector<8x1xf32>
    %cst_23 = arith.constant 1.280000e+02 : f32
    %37 = vector.broadcast %cst_23 : f32 to vector<8x1xf32>
    %38 = arith.divf %36, %37 : vector<8x1xf32>
    %39 = arith.mulf %34, %34 : vector<8x128xf32>
    %cst_24 = arith.constant dense<0.000000e+00> : vector<8xf32>
    %40 = vector.multi_reduction <add>, %39, %cst_24 [1] : vector<8x128xf32> to vector<8xf32>
    %41 = vector.shape_cast %40 : vector<8xf32> to vector<8x1xf32>
    %cst_25 = arith.constant 1.280000e+02 : f32
    %42 = vector.broadcast %cst_25 : f32 to vector<8x1xf32>
    %43 = arith.divf %41, %42 : vector<8x1xf32>
    %44 = arith.mulf %38, %38 : vector<8x1xf32>
    %45 = arith.subf %43, %44 : vector<8x1xf32>
    %46 = vector.broadcast %38 : vector<8x1xf32> to vector<8x128xf32>
    %47 = arith.subf %34, %46 : vector<8x128xf32>
    %cst_26 = arith.constant 9.99999974E-6 : f32
    %48 = vector.broadcast %cst_26 : f32 to vector<8x1xf32>
    %49 = arith.addf %45, %48 : vector<8x1xf32>
    %50 = math.rsqrt %49 : vector<8x1xf32>
    %51 = vector.broadcast %50 : vector<8x1xf32> to vector<8x128xf32>
    %52 = arith.mulf %47, %51 : vector<8x128xf32>
    %53 = vector.broadcast %1 : vector<1x128xf32> to vector<8x128xf32>
    %54 = arith.mulf %52, %53 : vector<8x128xf32>
    %55 = vector.broadcast %2 : vector<1x128xf32> to vector<8x128xf32>
    %56 = arith.addf %54, %55 : vector<8x128xf32>
    %c8_27 = arith.constant 8 : index
    %c0_28 = arith.constant 0 : index
    %57 = vector.load %arg16[%c8_27, %c0_28] : memref<64x128xf32, #tpu.memory_space<vmem>>, vector<8x128xf32>
    tpu.vector_store %arg16[%c8_27, %c0_28], %56 {strides = array<i32>} : memref<64x128xf32, #tpu.memory_space<vmem>>, vector<8x128xf32>,
    %c0_29 = arith.constant 0 : index
    %c0_30 = arith.constant 0 : index
    %58 = vector.load %arg4[%c0_29, %c0_30] : memref<128x256xbf16, #tpu.memory_space<vmem>>, vector<128x256xbf16>
    %c8_31 = arith.constant 8 : index
    %c0_32 = arith.constant 0 : index
    %59 = vector.load %arg17[%c8_31, %c0_32] : memref<64x256xf32, #tpu.memory_space<vmem>>, vector<8x256xf32>
    %60 = arith.truncf %52 : vector<8x128xf32> to vector<8x128xbf16>
    %cst_33 = arith.constant dense<0.000000e+00> : vector<8x256xf32>
    %61 = tpu.matmul %60, %58, %cst_33 {dimension_numbers = #tpu.dot_dimension_numbers<[1], [0], [0], [1], [0, 0, 1, 1], [], []>} : vector<8x128xbf16>, vector<128x256xbf16>, vector<8x256xf32> -> vector<8x256xf32>
    %62 = arith.addf %59, %61 : vector<8x256xf32>
    %63 = vector.extract_strided_slice %62 {offsets = [0, 0], sizes = [8, 128], strides = [1, 1]} : vector<8x256xf32> to vector<8x128xf32>
    %64 = math.tanh %63 : vector<8x128xf32>
    %65 = vector.extract_strided_slice %62 {offsets = [0, 128], sizes = [8, 128], strides = [1, 1]} : vector<8x256xf32> to vector<8x128xf32>
    %66 = arith.negf %65 : vector<8x128xf32>
    %67 = math.exp %66 : vector<8x128xf32>
    %cst_34 = arith.constant 1.000000e+00 : f32
    %68 = vector.broadcast %cst_34 : f32 to vector<8x128xf32>
    %69 = arith.addf %68, %67 : vector<8x128xf32>
    %70 = arith.divf %68, %69 : vector<8x128xf32>
    %cst_35 = arith.constant 1.000000e+00 : f32
    %71 = vector.broadcast %cst_35 : f32 to vector<8x128xf32>
    %72 = arith.subf %71, %70 : vector<8x128xf32>
    %73 = arith.mulf %56, %72 : vector<8x128xf32>
    %74 = arith.mulf %64, %70 : vector<8x128xf32>
    %75 = arith.addf %73, %74 : vector<8x128xf32>
    %cst_36 = arith.constant dense<0.000000e+00> : vector<8xf32>
    %76 = vector.multi_reduction <add>, %75, %cst_36 [1] : vector<8x128xf32> to vector<8xf32>
    %77 = vector.shape_cast %76 : vector<8xf32> to vector<8x1xf32>
    %cst_37 = arith.constant 1.280000e+02 : f32
    %78 = vector.broadcast %cst_37 : f32 to vector<8x1xf32>
    %79 = arith.divf %77, %78 : vector<8x1xf32>
    %80 = arith.mulf %75, %75 : vector<8x128xf32>
    %cst_38 = arith.constant dense<0.000000e+00> : vector<8xf32>
    %81 = vector.multi_reduction <add>, %80, %cst_38 [1] : vector<8x128xf32> to vector<8xf32>
    %82 = vector.shape_cast %81 : vector<8xf32> to vector<8x1xf32>
    %cst_39 = arith.constant 1.280000e+02 : f32
    %83 = vector.broadcast %cst_39 : f32 to vector<8x1xf32>
    %84 = arith.divf %82, %83 : vector<8x1xf32>
    %85 = arith.mulf %79, %79 : vector<8x1xf32>
    %86 = arith.subf %84, %85 : vector<8x1xf32>
    %87 = vector.broadcast %79 : vector<8x1xf32> to vector<8x128xf32>
    %88 = arith.subf %75, %87 : vector<8x128xf32>
    %cst_40 = arith.constant 9.99999974E-6 : f32
    %89 = vector.broadcast %cst_40 : f32 to vector<8x1xf32>
    %90 = arith.addf %86, %89 : vector<8x1xf32>
    %91 = math.rsqrt %90 : vector<8x1xf32>
    %92 = vector.broadcast %91 : vector<8x1xf32> to vector<8x128xf32>
    %93 = arith.mulf %88, %92 : vector<8x128xf32>
    %94 = vector.broadcast %1 : vector<1x128xf32> to vector<8x128xf32>
    %95 = arith.mulf %93, %94 : vector<8x128xf32>
    %96 = vector.broadcast %2 : vector<1x128xf32> to vector<8x128xf32>
    %97 = arith.addf %95, %96 : vector<8x128xf32>
    %c16 = arith.constant 16 : index
    %c0_41 = arith.constant 0 : index
    %98 = vector.load %arg16[%c16, %c0_41] : memref<64x128xf32, #tpu.memory_space<vmem>>, vector<8x128xf32>
    tpu.vector_store %arg16[%c16, %c0_41], %97 {strides = array<i32>} : memref<64x128xf32, #tpu.memory_space<vmem>>, vector<8x128xf32>,
    %c16_42 = arith.constant 16 : index
    %c0_43 = arith.constant 0 : index
    %99 = vector.load %arg17[%c16_42, %c0_43] : memref<64x256xf32, #tpu.memory_space<vmem>>, vector<8x256xf32>
    %100 = arith.truncf %93 : vector<8x128xf32> to vector<8x128xbf16>
    %cst_44 = arith.constant dense<0.000000e+00> : vector<8x256xf32>
    %101 = tpu.matmul %100, %58, %cst_44 {dimension_numbers = #tpu.dot_dimension_numbers<[1], [0], [0], [1], [0, 0, 1, 1], [], []>} : vector<8x128xbf16>, vector<128x256xbf16>, vector<8x256xf32> -> vector<8x256xf32>
    %102 = arith.addf %99, %101 : vector<8x256xf32>
    %103 = vector.extract_strided_slice %102 {offsets = [0, 0], sizes = [8, 128], strides = [1, 1]} : vector<8x256xf32> to vector<8x128xf32>
    %104 = math.tanh %103 : vector<8x128xf32>
    %105 = vector.extract_strided_slice %102 {offsets = [0, 128], sizes = [8, 128], strides = [1, 1]} : vector<8x256xf32> to vector<8x128xf32>
    %106 = arith.negf %105 : vector<8x128xf32>
    %107 = math.exp %106 : vector<8x128xf32>
    %cst_45 = arith.constant 1.000000e+00 : f32
    %108 = vector.broadcast %cst_45 : f32 to vector<8x128xf32>
    %109 = arith.addf %108, %107 : vector<8x128xf32>
    %110 = arith.divf %108, %109 : vector<8x128xf32>
    %cst_46 = arith.constant 1.000000e+00 : f32
    %111 = vector.broadcast %cst_46 : f32 to vector<8x128xf32>
    %112 = arith.subf %111, %110 : vector<8x128xf32>
    %113 = arith.mulf %97, %112 : vector<8x128xf32>
    %114 = arith.mulf %104, %110 : vector<8x128xf32>
    %115 = arith.addf %113, %114 : vector<8x128xf32>
    %cst_47 = arith.constant dense<0.000000e+00> : vector<8xf32>
    %116 = vector.multi_reduction <add>, %115, %cst_47 [1] : vector<8x128xf32> to vector<8xf32>
    %117 = vector.shape_cast %116 : vector<8xf32> to vector<8x1xf32>
    %cst_48 = arith.constant 1.280000e+02 : f32
    %118 = vector.broadcast %cst_48 : f32 to vector<8x1xf32>
    %119 = arith.divf %117, %118 : vector<8x1xf32>
    %120 = arith.mulf %115, %115 : vector<8x128xf32>
    %cst_49 = arith.constant dense<0.000000e+00> : vector<8xf32>
    %121 = vector.multi_reduction <add>, %120, %cst_49 [1] : vector<8x128xf32> to vector<8xf32>
    %122 = vector.shape_cast %121 : vector<8xf32> to vector<8x1xf32>
    %cst_50 = arith.constant 1.280000e+02 : f32
    %123 = vector.broadcast %cst_50 : f32 to vector<8x1xf32>
    %124 = arith.divf %122, %123 : vector<8x1xf32>
    %125 = arith.mulf %119, %119 : vector<8x1xf32>
    %126 = arith.subf %124, %125 : vector<8x1xf32>
    %127 = vector.broadcast %119 : vector<8x1xf32> to vector<8x128xf32>
    %128 = arith.subf %115, %127 : vector<8x128xf32>
    %cst_51 = arith.constant 9.99999974E-6 : f32
    %129 = vector.broadcast %cst_51 : f32 to vector<8x1xf32>
    %130 = arith.addf %126, %129 : vector<8x1xf32>
    %131 = math.rsqrt %130 : vector<8x1xf32>
    %132 = vector.broadcast %131 : vector<8x1xf32> to vector<8x128xf32>
    %133 = arith.mulf %128, %132 : vector<8x128xf32>
    %134 = vector.broadcast %1 : vector<1x128xf32> to vector<8x128xf32>
    %135 = arith.mulf %133, %134 : vector<8x128xf32>
    %136 = vector.broadcast %2 : vector<1x128xf32> to vector<8x128xf32>
    %137 = arith.addf %135, %136 : vector<8x128xf32>
    %c24 = arith.constant 24 : index
    %c0_52 = arith.constant 0 : index
    %138 = vector.load %arg16[%c24, %c0_52] : memref<64x128xf32, #tpu.memory_space<vmem>>, vector<8x128xf32>
    tpu.vector_store %arg16[%c24, %c0_52], %137 {strides = array<i32>} : memref<64x128xf32, #tpu.memory_space<vmem>>, vector<8x128xf32>,
    %c24_53 = arith.constant 24 : index
    %c0_54 = arith.constant 0 : index
    %139 = vector.load %arg17[%c24_53, %c0_54] : memref<64x256xf32, #tpu.memory_space<vmem>>, vector<8x256xf32>
    %140 = arith.truncf %133 : vector<8x128xf32> to vector<8x128xbf16>
    %cst_55 = arith.constant dense<0.000000e+00> : vector<8x256xf32>
    %141 = tpu.matmul %140, %58, %cst_55 {dimension_numbers = #tpu.dot_dimension_numbers<[1], [0], [0], [1], [0, 0, 1, 1], [], []>} : vector<8x128xbf16>, vector<128x256xbf16>, vector<8x256xf32> -> vector<8x256xf32>
    %142 = arith.addf %139, %141 : vector<8x256xf32>
    %143 = vector.extract_strided_slice %142 {offsets = [0, 0], sizes = [8, 128], strides = [1, 1]} : vector<8x256xf32> to vector<8x128xf32>
    %144 = math.tanh %143 : vector<8x128xf32>
    %145 = vector.extract_strided_slice %142 {offsets = [0, 128], sizes = [8, 128], strides = [1, 1]} : vector<8x256xf32> to vector<8x128xf32>
    %146 = arith.negf %145 : vector<8x128xf32>
    %147 = math.exp %146 : vector<8x128xf32>
    %cst_56 = arith.constant 1.000000e+00 : f32
    %148 = vector.broadcast %cst_56 : f32 to vector<8x128xf32>
    %149 = arith.addf %148, %147 : vector<8x128xf32>
    %150 = arith.divf %148, %149 : vector<8x128xf32>
    %cst_57 = arith.constant 1.000000e+00 : f32
    %151 = vector.broadcast %cst_57 : f32 to vector<8x128xf32>
    %152 = arith.subf %151, %150 : vector<8x128xf32>
    %153 = arith.mulf %137, %152 : vector<8x128xf32>
    %154 = arith.mulf %144, %150 : vector<8x128xf32>
    %155 = arith.addf %153, %154 : vector<8x128xf32>
    %cst_58 = arith.constant dense<0.000000e+00> : vector<8xf32>
    %156 = vector.multi_reduction <add>, %155, %cst_58 [1] : vector<8x128xf32> to vector<8xf32>
    %157 = vector.shape_cast %156 : vector<8xf32> to vector<8x1xf32>
    %cst_59 = arith.constant 1.280000e+02 : f32
    %158 = vector.broadcast %cst_59 : f32 to vector<8x1xf32>
    %159 = arith.divf %157, %158 : vector<8x1xf32>
    %160 = arith.mulf %155, %155 : vector<8x128xf32>
    %cst_60 = arith.constant dense<0.000000e+00> : vector<8xf32>
    %161 = vector.multi_reduction <add>, %160, %cst_60 [1] : vector<8x128xf32> to vector<8xf32>
    %162 = vector.shape_cast %161 : vector<8xf32> to vector<8x1xf32>
    %cst_61 = arith.constant 1.280000e+02 : f32
    %163 = vector.broadcast %cst_61 : f32 to vector<8x1xf32>
    %164 = arith.divf %162, %163 : vector<8x1xf32>
    %165 = arith.mulf %159, %159 : vector<8x1xf32>
    %166 = arith.subf %164, %165 : vector<8x1xf32>
    %167 = vector.broadcast %159 : vector<8x1xf32> to vector<8x128xf32>
    %168 = arith.subf %155, %167 : vector<8x128xf32>
    %cst_62 = arith.constant 9.99999974E-6 : f32
    %169 = vector.broadcast %cst_62 : f32 to vector<8x1xf32>
    %170 = arith.addf %166, %169 : vector<8x1xf32>
    %171 = math.rsqrt %170 : vector<8x1xf32>
    %172 = vector.broadcast %171 : vector<8x1xf32> to vector<8x128xf32>
    %173 = arith.mulf %168, %172 : vector<8x128xf32>
    %174 = vector.broadcast %1 : vector<1x128xf32> to vector<8x128xf32>
    %175 = arith.mulf %173, %174 : vector<8x128xf32>
    %176 = vector.broadcast %2 : vector<1x128xf32> to vector<8x128xf32>
    %177 = arith.addf %175, %176 : vector<8x128xf32>
    %c32 = arith.constant 32 : index
    %c0_63 = arith.constant 0 : index
    %178 = vector.load %arg16[%c32, %c0_63] : memref<64x128xf32, #tpu.memory_space<vmem>>, vector<8x128xf32>
    tpu.vector_store %arg16[%c32, %c0_63], %177 {strides = array<i32>} : memref<64x128xf32, #tpu.memory_space<vmem>>, vector<8x128xf32>,
    %c32_64 = arith.constant 32 : index
    %c0_65 = arith.constant 0 : index
    %179 = vector.load %arg17[%c32_64, %c0_65] : memref<64x256xf32, #tpu.memory_space<vmem>>, vector<8x256xf32>
    %180 = arith.truncf %173 : vector<8x128xf32> to vector<8x128xbf16>
    %cst_66 = arith.constant dense<0.000000e+00> : vector<8x256xf32>
    %181 = tpu.matmul %180, %58, %cst_66 {dimension_numbers = #tpu.dot_dimension_numbers<[1], [0], [0], [1], [0, 0, 1, 1], [], []>} : vector<8x128xbf16>, vector<128x256xbf16>, vector<8x256xf32> -> vector<8x256xf32>
    %182 = arith.addf %179, %181 : vector<8x256xf32>
    %183 = vector.extract_strided_slice %182 {offsets = [0, 0], sizes = [8, 128], strides = [1, 1]} : vector<8x256xf32> to vector<8x128xf32>
    %184 = math.tanh %183 : vector<8x128xf32>
    %185 = vector.extract_strided_slice %182 {offsets = [0, 128], sizes = [8, 128], strides = [1, 1]} : vector<8x256xf32> to vector<8x128xf32>
    %186 = arith.negf %185 : vector<8x128xf32>
    %187 = math.exp %186 : vector<8x128xf32>
    %cst_67 = arith.constant 1.000000e+00 : f32
    %188 = vector.broadcast %cst_67 : f32 to vector<8x128xf32>
    %189 = arith.addf %188, %187 : vector<8x128xf32>
    %190 = arith.divf %188, %189 : vector<8x128xf32>
    %cst_68 = arith.constant 1.000000e+00 : f32
    %191 = vector.broadcast %cst_68 : f32 to vector<8x128xf32>
    %192 = arith.subf %191, %190 : vector<8x128xf32>
    %193 = arith.mulf %177, %192 : vector<8x128xf32>
    %194 = arith.mulf %184, %190 : vector<8x128xf32>
    %195 = arith.addf %193, %194 : vector<8x128xf32>
    %cst_69 = arith.constant dense<0.000000e+00> : vector<8xf32>
    %196 = vector.multi_reduction <add>, %195, %cst_69 [1] : vector<8x128xf32> to vector<8xf32>
    %197 = vector.shape_cast %196 : vector<8xf32> to vector<8x1xf32>
    %cst_70 = arith.constant 1.280000e+02 : f32
    %198 = vector.broadcast %cst_70 : f32 to vector<8x1xf32>
    %199 = arith.divf %197, %198 : vector<8x1xf32>
    %200 = arith.mulf %195, %195 : vector<8x128xf32>
    %cst_71 = arith.constant dense<0.000000e+00> : vector<8xf32>
    %201 = vector.multi_reduction <add>, %200, %cst_71 [1] : vector<8x128xf32> to vector<8xf32>
    %202 = vector.shape_cast %201 : vector<8xf32> to vector<8x1xf32>
    %cst_72 = arith.constant 1.280000e+02 : f32
    %203 = vector.broadcast %cst_72 : f32 to vector<8x1xf32>
    %204 = arith.divf %202, %203 : vector<8x1xf32>
    %205 = arith.mulf %199, %199 : vector<8x1xf32>
    %206 = arith.subf %204, %205 : vector<8x1xf32>
    %207 = vector.broadcast %199 : vector<8x1xf32> to vector<8x128xf32>
    %208 = arith.subf %195, %207 : vector<8x128xf32>
    %cst_73 = arith.constant 9.99999974E-6 : f32
    %209 = vector.broadcast %cst_73 : f32 to vector<8x1xf32>
    %210 = arith.addf %206, %209 : vector<8x1xf32>
    %211 = math.rsqrt %210 : vector<8x1xf32>
    %212 = vector.broadcast %211 : vector<8x1xf32> to vector<8x128xf32>
    %213 = arith.mulf %208, %212 : vector<8x128xf32>
    %214 = vector.broadcast %1 : vector<1x128xf32> to vector<8x128xf32>
    %215 = arith.mulf %213, %214 : vector<8x128xf32>
    %216 = vector.broadcast %2 : vector<1x128xf32> to vector<8x128xf32>
    %217 = arith.addf %215, %216 : vector<8x128xf32>
    %c40 = arith.constant 40 : index
    %c0_74 = arith.constant 0 : index
    %218 = vector.load %arg16[%c40, %c0_74] : memref<64x128xf32, #tpu.memory_space<vmem>>, vector<8x128xf32>
    tpu.vector_store %arg16[%c40, %c0_74], %217 {strides = array<i32>} : memref<64x128xf32, #tpu.memory_space<vmem>>, vector<8x128xf32>,
    %c40_75 = arith.constant 40 : index
    %c0_76 = arith.constant 0 : index
    %219 = vector.load %arg17[%c40_75, %c0_76] : memref<64x256xf32, #tpu.memory_space<vmem>>, vector<8x256xf32>
    %220 = arith.truncf %213 : vector<8x128xf32> to vector<8x128xbf16>
    %cst_77 = arith.constant dense<0.000000e+00> : vector<8x256xf32>
    %221 = tpu.matmul %220, %58, %cst_77 {dimension_numbers = #tpu.dot_dimension_numbers<[1], [0], [0], [1], [0, 0, 1, 1], [], []>} : vector<8x128xbf16>, vector<128x256xbf16>, vector<8x256xf32> -> vector<8x256xf32>
    %222 = arith.addf %219, %221 : vector<8x256xf32>
    %223 = vector.extract_strided_slice %222 {offsets = [0, 0], sizes = [8, 128], strides = [1, 1]} : vector<8x256xf32> to vector<8x128xf32>
    %224 = math.tanh %223 : vector<8x128xf32>
    %225 = vector.extract_strided_slice %222 {offsets = [0, 128], sizes = [8, 128], strides = [1, 1]} : vector<8x256xf32> to vector<8x128xf32>
    %226 = arith.negf %225 : vector<8x128xf32>
    %227 = math.exp %226 : vector<8x128xf32>
    %cst_78 = arith.constant 1.000000e+00 : f32
    %228 = vector.broadcast %cst_78 : f32 to vector<8x128xf32>
    %229 = arith.addf %228, %227 : vector<8x128xf32>
    %230 = arith.divf %228, %229 : vector<8x128xf32>
    %cst_79 = arith.constant 1.000000e+00 : f32
    %231 = vector.broadcast %cst_79 : f32 to vector<8x128xf32>
    %232 = arith.subf %231, %230 : vector<8x128xf32>
    %233 = arith.mulf %217, %232 : vector<8x128xf32>
    %234 = arith.mulf %224, %230 : vector<8x128xf32>
    %235 = arith.addf %233, %234 : vector<8x128xf32>
    %cst_80 = arith.constant dense<0.000000e+00> : vector<8xf32>
    %236 = vector.multi_reduction <add>, %235, %cst_80 [1] : vector<8x128xf32> to vector<8xf32>
    %237 = vector.shape_cast %236 : vector<8xf32> to vector<8x1xf32>
    %cst_81 = arith.constant 1.280000e+02 : f32
    %238 = vector.broadcast %cst_81 : f32 to vector<8x1xf32>
    %239 = arith.divf %237, %238 : vector<8x1xf32>
    %240 = arith.mulf %235, %235 : vector<8x128xf32>
    %cst_82 = arith.constant dense<0.000000e+00> : vector<8xf32>
    %241 = vector.multi_reduction <add>, %240, %cst_82 [1] : vector<8x128xf32> to vector<8xf32>
    %242 = vector.shape_cast %241 : vector<8xf32> to vector<8x1xf32>
    %cst_83 = arith.constant 1.280000e+02 : f32
    %243 = vector.broadcast %cst_83 : f32 to vector<8x1xf32>
    %244 = arith.divf %242, %243 : vector<8x1xf32>
    %245 = arith.mulf %239, %239 : vector<8x1xf32>
    %246 = arith.subf %244, %245 : vector<8x1xf32>
    %247 = vector.broadcast %239 : vector<8x1xf32> to vector<8x128xf32>
    %248 = arith.subf %235, %247 : vector<8x128xf32>
    %cst_84 = arith.constant 9.99999974E-6 : f32
    %249 = vector.broadcast %cst_84 : f32 to vector<8x1xf32>
    %250 = arith.addf %246, %249 : vector<8x1xf32>
    %251 = math.rsqrt %250 : vector<8x1xf32>
    %252 = vector.broadcast %251 : vector<8x1xf32> to vector<8x128xf32>
    %253 = arith.mulf %248, %252 : vector<8x128xf32>
    %254 = vector.broadcast %1 : vector<1x128xf32> to vector<8x128xf32>
    %255 = arith.mulf %253, %254 : vector<8x128xf32>
    %256 = vector.broadcast %2 : vector<1x128xf32> to vector<8x128xf32>
    %257 = arith.addf %255, %256 : vector<8x128xf32>
    %c48 = arith.constant 48 : index
    %c0_85 = arith.constant 0 : index
    %258 = vector.load %arg16[%c48, %c0_85] : memref<64x128xf32, #tpu.memory_space<vmem>>, vector<8x128xf32>
    tpu.vector_store %arg16[%c48, %c0_85], %257 {strides = array<i32>} : memref<64x128xf32, #tpu.memory_space<vmem>>, vector<8x128xf32>,
    %c48_86 = arith.constant 48 : index
    %c0_87 = arith.constant 0 : index
    %259 = vector.load %arg17[%c48_86, %c0_87] : memref<64x256xf32, #tpu.memory_space<vmem>>, vector<8x256xf32>
    %260 = arith.truncf %253 : vector<8x128xf32> to vector<8x128xbf16>
    %cst_88 = arith.constant dense<0.000000e+00> : vector<8x256xf32>
    %261 = tpu.matmul %260, %58, %cst_88 {dimension_numbers = #tpu.dot_dimension_numbers<[1], [0], [0], [1], [0, 0, 1, 1], [], []>} : vector<8x128xbf16>, vector<128x256xbf16>, vector<8x256xf32> -> vector<8x256xf32>
    %262 = arith.addf %259, %261 : vector<8x256xf32>
    %263 = vector.extract_strided_slice %262 {offsets = [0, 0], sizes = [8, 128], strides = [1, 1]} : vector<8x256xf32> to vector<8x128xf32>
    %264 = math.tanh %263 : vector<8x128xf32>
    %265 = vector.extract_strided_slice %262 {offsets = [0, 128], sizes = [8, 128], strides = [1, 1]} : vector<8x256xf32> to vector<8x128xf32>
    %266 = arith.negf %265 : vector<8x128xf32>
    %267 = math.exp %266 : vector<8x128xf32>
    %cst_89 = arith.constant 1.000000e+00 : f32
    %268 = vector.broadcast %cst_89 : f32 to vector<8x128xf32>
    %269 = arith.addf %268, %267 : vector<8x128xf32>
    %270 = arith.divf %268, %269 : vector<8x128xf32>
    %cst_90 = arith.constant 1.000000e+00 : f32
    %271 = vector.broadcast %cst_90 : f32 to vector<8x128xf32>
    %272 = arith.subf %271, %270 : vector<8x128xf32>
    %273 = arith.mulf %257, %272 : vector<8x128xf32>
    %274 = arith.mulf %264, %270 : vector<8x128xf32>
    %275 = arith.addf %273, %274 : vector<8x128xf32>
    %cst_91 = arith.constant dense<0.000000e+00> : vector<8xf32>
    %276 = vector.multi_reduction <add>, %275, %cst_91 [1] : vector<8x128xf32> to vector<8xf32>
    %277 = vector.shape_cast %276 : vector<8xf32> to vector<8x1xf32>
    %cst_92 = arith.constant 1.280000e+02 : f32
    %278 = vector.broadcast %cst_92 : f32 to vector<8x1xf32>
    %279 = arith.divf %277, %278 : vector<8x1xf32>
    %280 = arith.mulf %275, %275 : vector<8x128xf32>
    %cst_93 = arith.constant dense<0.000000e+00> : vector<8xf32>
    %281 = vector.multi_reduction <add>, %280, %cst_93 [1] : vector<8x128xf32> to vector<8xf32>
    %282 = vector.shape_cast %281 : vector<8xf32> to vector<8x1xf32>
    %cst_94 = arith.constant 1.280000e+02 : f32
    %283 = vector.broadcast %cst_94 : f32 to vector<8x1xf32>
    %284 = arith.divf %282, %283 : vector<8x1xf32>
    %285 = arith.mulf %279, %279 : vector<8x1xf32>
    %286 = arith.subf %284, %285 : vector<8x1xf32>
    %287 = vector.broadcast %279 : vector<8x1xf32> to vector<8x128xf32>
    %288 = arith.subf %275, %287 : vector<8x128xf32>
    %cst_95 = arith.constant 9.99999974E-6 : f32
    %289 = vector.broadcast %cst_95 : f32 to vector<8x1xf32>
    %290 = arith.addf %286, %289 : vector<8x1xf32>
    %291 = math.rsqrt %290 : vector<8x1xf32>
    %292 = vector.broadcast %291 : vector<8x1xf32> to vector<8x128xf32>
    %293 = arith.mulf %288, %292 : vector<8x128xf32>
    %294 = vector.broadcast %1 : vector<1x128xf32> to vector<8x128xf32>
    %295 = arith.mulf %293, %294 : vector<8x128xf32>
    %296 = vector.broadcast %2 : vector<1x128xf32> to vector<8x128xf32>
    %297 = arith.addf %295, %296 : vector<8x128xf32>
    %c56 = arith.constant 56 : index
    %c0_96 = arith.constant 0 : index
    %298 = vector.load %arg16[%c56, %c0_96] : memref<64x128xf32, #tpu.memory_space<vmem>>, vector<8x128xf32>
    tpu.vector_store %arg16[%c56, %c0_96], %297 {strides = array<i32>} : memref<64x128xf32, #tpu.memory_space<vmem>>, vector<8x128xf32>,
    %c0_97 = arith.constant 0 : index
    %c0_98 = arith.constant 0 : index
    %299 = vector.load %arg16[%c0_97, %c0_98] : memref<64x128xf32, #tpu.memory_space<vmem>>, vector<64x128xf32>
    %c0_99 = arith.constant 0 : index
    %c0_100 = arith.constant 0 : index
    %300 = vector.load %arg8[%c0_99, %c0_100] : memref<128x256xf32, #tpu.memory_space<vmem>>, vector<128x256xf32>
    %cst_101 = arith.constant dense<0.000000e+00> : vector<64x256xf32>
    %301 = tpu.matmul %299, %300, %cst_101 {dimension_numbers = #tpu.dot_dimension_numbers<[1], [0], [0], [1], [0, 0, 1, 1], [], []>} : vector<64x128xf32>, vector<128x256xf32>, vector<64x256xf32> -> vector<64x256xf32>
    %c0_102 = arith.constant 0 : index
    %c0_103 = arith.constant 0 : index
    %302 = vector.load %arg9[%c0_102, %c0_103] : memref<1x256xf32, #tpu.memory_space<vmem>>, vector<1x256xf32>
    %303 = vector.broadcast %302 : vector<1x256xf32> to vector<64x256xf32>
    %304 = arith.addf %301, %303 : vector<64x256xf32>
    %cst_104 = arith.constant 0.000000e+00 : f32
    %305 = vector.broadcast %cst_104 : f32 to vector<64x256xf32>
    %306 = arith.maximumf %304, %305 : vector<64x256xf32>
    %c0_105 = arith.constant 0 : index
    %c0_106 = arith.constant 0 : index
    %307 = vector.load %arg10[%c0_105, %c0_106] : memref<256x256xf32, #tpu.memory_space<vmem>>, vector<256x256xf32>
    %cst_107 = arith.constant dense<0.000000e+00> : vector<64x256xf32>
    %308 = tpu.matmul %306, %307, %cst_107 {dimension_numbers = #tpu.dot_dimension_numbers<[1], [0], [0], [1], [0, 0, 1, 1], [], []>} : vector<64x256xf32>, vector<256x256xf32>, vector<64x256xf32> -> vector<64x256xf32>
    %c0_108 = arith.constant 0 : index
    %c0_109 = arith.constant 0 : index
    %309 = vector.load %arg11[%c0_108, %c0_109] : memref<1x256xf32, #tpu.memory_space<vmem>>, vector<1x256xf32>
    %310 = vector.broadcast %309 : vector<1x256xf32> to vector<64x256xf32>
    %311 = arith.addf %308, %310 : vector<64x256xf32>
    %cst_110 = arith.constant 0.000000e+00 : f32
    %312 = vector.broadcast %cst_110 : f32 to vector<64x256xf32>
    %313 = arith.maximumf %311, %312 : vector<64x256xf32>
    %314 = vector.extract_strided_slice %313 {offsets = [0, 128], sizes = [64, 128], strides = [1, 1]} : vector<64x256xf32> to vector<64x128xf32>
    %c0_111 = arith.constant 0 : index
    %c0_112 = arith.constant 0 : index
    %315 = vector.load %arg13[%c0_111, %c0_112] : memref<128x8xf32, #tpu.memory_space<vmem>>, vector<128x8xf32>
    %cst_113 = arith.constant dense<0.000000e+00> : vector<64x8xf32>
    %316 = tpu.matmul %314, %315, %cst_113 {dimension_numbers = #tpu.dot_dimension_numbers<[1], [0], [0], [1], [0, 0, 1, 1], [], []>} : vector<64x128xf32>, vector<128x8xf32>, vector<64x8xf32> -> vector<64x8xf32>
    %c0_114 = arith.constant 0 : index
    %c0_115 = arith.constant 0 : index
    %317 = vector.load %arg14[%c0_114, %c0_115] : memref<1x8xf32, #tpu.memory_space<vmem>>, vector<1x8xf32>
    %318 = vector.broadcast %317 : vector<1x8xf32> to vector<64x8xf32>
    %319 = arith.addf %316, %318 : vector<64x8xf32>
    %320 = vector.extract_strided_slice %313 {offsets = [0, 0], sizes = [64, 128], strides = [1, 1]} : vector<64x256xf32> to vector<64x128xf32>
    %c0_116 = arith.constant 0 : index
    %c0_117 = arith.constant 0 : index
    %321 = vector.load %arg12[%c0_116, %c0_117] : memref<128x8xf32, #tpu.memory_space<vmem>>, vector<128x8xf32>
    %cst_118 = arith.constant dense<0.000000e+00> : vector<64x8xf32>
    %322 = tpu.matmul %320, %321, %cst_118 {dimension_numbers = #tpu.dot_dimension_numbers<[1], [0], [0], [1], [0, 0, 1, 1], [], []>} : vector<64x128xf32>, vector<128x8xf32>, vector<64x8xf32> -> vector<64x8xf32>
    %323 = arith.addf %319, %322 : vector<64x8xf32>
    %324 = vector.extract_strided_slice %323 {offsets = [0, 0], sizes = [64, 1], strides = [1, 1]} : vector<64x8xf32> to vector<64x1xf32>
    %cst_119 = arith.constant 0.000000e+00 : f32
    %325 = vector.broadcast %cst_119 : f32 to vector<64x1xf32>
    %326 = arith.maximumf %324, %325 : vector<64x1xf32>
    %327 = math.absf %324 : vector<64x1xf32>
    %cst_120 = arith.constant 0.000000e+00 : f32
    %328 = vector.broadcast %cst_120 : f32 to vector<64x1xf32>
    %329 = arith.subf %328, %327 : vector<64x1xf32>
    %330 = math.exp %329 : vector<64x1xf32>
    %cst_121 = arith.constant 1.000000e+00 : f32
    %331 = vector.broadcast %cst_121 : f32 to vector<64x1xf32>
    %332 = arith.addf %331, %330 : vector<64x1xf32>
    %333 = math.log %332 : vector<64x1xf32>
    %334 = arith.addf %326, %333 : vector<64x1xf32>
    %335 = arith.subf %334, %324 : vector<64x1xf32>
    %336 = vector.extract_strided_slice %0 {offsets = [0, 0], sizes = [64, 1], strides = [1, 1]} : vector<64x2xf32> to vector<64x1xf32>
    %337 = arith.mulf %336, %335 : vector<64x1xf32>
    %338 = vector.extract_strided_slice %0 {offsets = [0, 1], sizes = [64, 1], strides = [1, 1]} : vector<64x2xf32> to vector<64x1xf32>
    %339 = arith.mulf %338, %334 : vector<64x1xf32>
    %340 = arith.addf %337, %339 : vector<64x1xf32>
    %cst_122 = arith.constant 0.000000e+00 : f32
    %341 = vector.broadcast %cst_122 : f32 to vector<64x1xf32>
    %342 = arith.subf %341, %340 : vector<64x1xf32>
    %343 = tpu.iota {dimensions = array<i32: 1>} : vector<64x8xi32>
    %c0_i32 = arith.constant 0 : i32
    %344 = vector.broadcast %c0_i32 : i32 to vector<64x8xi32>
    %345 = arith.cmpi eq, %343, %344 : vector<64x8xi32>
    %346 = vector.shape_cast %342 : vector<64x1xf32> to vector<64x1xf32>
    %347 = vector.broadcast %346 : vector<64x1xf32> to vector<64x8xf32>
    %348 = arith.select %345, %347, %323 : vector<64x8xi1>, vector<64x8xf32>
    %c0_123 = arith.constant 0 : index
    %c0_124 = arith.constant 0 : index
    %349 = vector.load %arg15[%c0_123, %c0_124] : memref<64x8xf32, #tpu.memory_space<vmem>>, vector<64x8xf32>
    tpu.vector_store %arg15[%c0_123, %c0_124], %348 {strides = array<i32>} : memref<64x8xf32, #tpu.memory_space<vmem>>, vector<64x8xf32>,
    return
  }
  func.func @transform_0(%arg0: i32) -> (i32, i32) {
    %c0_i32 = arith.constant 0 : i32
    %c0_i32_0 = arith.constant 0 : i32
    return %arg0, %c0_i32 : i32, i32
  }
  func.func @transform_1(%arg0: i32) -> (i32, i32) {
    %c0_i32 = arith.constant 0 : i32
    %c0_i32_0 = arith.constant 0 : i32
    %c0_i32_1 = arith.constant 0 : i32
    return %c0_i32, %c0_i32_0 : i32, i32
  }
  func.func @transform_2(%arg0: i32) -> (i32, i32) {
    %c0_i32 = arith.constant 0 : i32
    %c0_i32_0 = arith.constant 0 : i32
    %c0_i32_1 = arith.constant 0 : i32
    return %c0_i32, %c0_i32_0 : i32, i32
  }
  func.func @transform_3(%arg0: i32) -> (i32, i32) {
    %c0_i32 = arith.constant 0 : i32
    %c0_i32_0 = arith.constant 0 : i32
    %c0_i32_1 = arith.constant 0 : i32
    return %c0_i32, %c0_i32_0 : i32, i32
  }
  func.func @transform_4(%arg0: i32) -> (i32, i32) {
    %c0_i32 = arith.constant 0 : i32
    %c0_i32_0 = arith.constant 0 : i32
    %c0_i32_1 = arith.constant 0 : i32
    return %c0_i32, %c0_i32_0 : i32, i32
  }
  func.func @transform_5(%arg0: i32) -> (i32, i32) {
    %c0_i32 = arith.constant 0 : i32
    %c0_i32_0 = arith.constant 0 : i32
    %c0_i32_1 = arith.constant 0 : i32
    return %c0_i32, %c0_i32_0 : i32, i32
  }
  func.func @transform_6(%arg0: i32) -> (i32, i32) {
    %c0_i32 = arith.constant 0 : i32
    %c0_i32_0 = arith.constant 0 : i32
    %c0_i32_1 = arith.constant 0 : i32
    return %c0_i32, %c0_i32_0 : i32, i32
  }
  func.func @transform_7(%arg0: i32) -> (i32, i32) {
    %c0_i32 = arith.constant 0 : i32
    %c0_i32_0 = arith.constant 0 : i32
    %c0_i32_1 = arith.constant 0 : i32
    return %c0_i32, %c0_i32_0 : i32, i32
  }
  func.func @transform_8(%arg0: i32) -> (i32, i32) {
    %c0_i32 = arith.constant 0 : i32
    %c0_i32_0 = arith.constant 0 : i32
    %c0_i32_1 = arith.constant 0 : i32
    return %c0_i32, %c0_i32_0 : i32, i32
  }
  func.func @transform_9(%arg0: i32) -> (i32, i32) {
    %c0_i32 = arith.constant 0 : i32
    %c0_i32_0 = arith.constant 0 : i32
    %c0_i32_1 = arith.constant 0 : i32
    return %c0_i32, %c0_i32_0 : i32, i32
  }
  func.func @transform_10(%arg0: i32) -> (i32, i32) {
    %c0_i32 = arith.constant 0 : i32
    %c0_i32_0 = arith.constant 0 : i32
    %c0_i32_1 = arith.constant 0 : i32
    return %c0_i32, %c0_i32_0 : i32, i32
  }
  func.func @transform_11(%arg0: i32) -> (i32, i32) {
    %c0_i32 = arith.constant 0 : i32
    %c0_i32_0 = arith.constant 0 : i32
    %c0_i32_1 = arith.constant 0 : i32
    return %c0_i32, %c0_i32_0 : i32, i32
  }
  func.func @transform_12(%arg0: i32) -> (i32, i32) {
    %c0_i32 = arith.constant 0 : i32
    %c0_i32_0 = arith.constant 0 : i32
    %c0_i32_1 = arith.constant 0 : i32
    return %c0_i32, %c0_i32_0 : i32, i32
  }
  func.func @transform_13(%arg0: i32) -> (i32, i32) {
    %c0_i32 = arith.constant 0 : i32
    %c0_i32_0 = arith.constant 0 : i32
    %c0_i32_1 = arith.constant 0 : i32
    return %c0_i32, %c0_i32_0 : i32, i32
  }
  func.func @transform_14(%arg0: i32) -> (i32, i32) {
    %c0_i32 = arith.constant 0 : i32
    %c0_i32_0 = arith.constant 0 : i32
    return %arg0, %c0_i32 : i32, i32
  }
}

</mosaic_0001>

<bundles_post_ra>
// kernel: atan2.3
= control target key start
LH: loop header
LB: loop body
LE: loop exit
PB: predicated region body
PF: predicated region fallthrough
CT: control target
= control target key end

     0   :  { %3 = vsyncpa [#allocation1], 0  ;;  %v110_v40 = vmov 0.0   ;;  %v111_v43 = vmov 0.7853982   ;;  %s156_s0 = inlined_call_operand.vmem [shape: f32[2], index: 0, kind: input, shape index: {}]   ;;  %s157_s1 = inlined_call_operand.vmem [shape: f32[2], index: 1, kind: input, shape index: {}]   ;;  %s158_s2 = inlined_call_operand.hbm [shape: f32[2], index: 2, kind: output, shape index: {}]  }
   0x1   :  { %v131_v0 = vld [vmem:[%s156_s0] sm:$0x1]  ;;  %s72_s2 = sshll.u32 %s158_s2, 4  ;;  %s73_s2 = int_to_ptr.hbm [resolvable:$true] %s72_s2 }
   0x2   :  { %v5_v1 = vld [vmem:[%s157_s1] sm:$0x1]  ;;  %v7_v3 = vand.u32 2147483647, %v131_v0  ;;  %vm54_vm5 = vcmp.ne.f32.partialorder %v131_v0, %v131_v0  ;;  %vm51_vm13 = vcmp.eq.f32.partialorder %v131_v0, 0.0  ;;  %v64_v47 = vand.u32 2147483648, %v131_v0 }
   0x3   :  { %v6_v2 = vand.u32 2147483647, %v5_v1  ;;  %vm53_vm4 = vcmp.ne.f32.partialorder %v5_v1, %v5_v1  ;;  %vm49_vm11 = vcmp.lt.s32.totalorder %v5_v1, 0  ;;  %vm46_vm12 = vcmp.lt.f32.partialorder %v5_v1, 0.0  ;;  %s112_s1 = smov [#allocation0]  }
   0x4   :  { %vm139_vm6 = vmor %vm53_vm4, %vm54_vm5  ;;  %vm60_vm8 = vcmp.eq.s32.totalorder %v7_v3, inf  ;;  %v50_v41 = vsel %vm49_vm11, 3.1415927, %v110_v40  ;;  %v58_v44 = vsel %vm46_vm12, 2.3561945, %v111_v43  ;;  %s70_s12 = sshll.u32 %s112_s1, 4  ;;  %s71_s12 = int_to_ptr.vmem [resolvable:$true] %s70_s12 }
   0x5   :  { %v9_v4 = vmax.f32 %v6_v2, %v7_v3  ;;  %v8_v12 = vmin.f32 %v6_v2, %v7_v3  ;;  %vm59_vm7 = vcmp.eq.s32.totalorder %v6_v2, inf  ;;  %vm43_vm10 = vcmp.gt.f32.partialorder %v7_v3, %v6_v2 }
   0x6   :  { %vm143_vm9 = vmand %vm59_vm7, %vm60_vm8 }
   0x7   :  { %82 = vrcp.f32 %v9_v4  ;;  %v21_v7 = vand.u32 2147483648, %v9_v4  ;;  %vm15_vm0 = vweird.f32 %v9_v4  ;;  %v19_v9 = vand.u32 2147483647, %v9_v4 }
   0x9   :  { %v22_v11 = vor.u32 1.1754944e-38, %v21_v7  ;;  %vm20_vm3 = vcmp.eq.f32.partialorder %v19_v9, 8.507059e+37 }
   0xd   :  { %v83_v5 = vpop.eup %82 }
   0xe   :  { %v11_v6 = vmul.f32 %v83_v5, %v9_v4  ;;  %vm16_vm1 = vweird.f32 %v83_v5 }
   0xf   :  { %vm17_vm2 = vmor %vm15_vm0, %vm16_vm1 }
  0x10   :  { %v12_v8 = vsub.f32 1.0, %v11_v6 }
  0x12   :  { %v13_v10 = vmul.f32 %v83_v5, %v12_v8 }
  0x14   :  { %v14_v13 = vadd.f32 %v83_v5, %v13_v10 }
  0x16   :  { %v18_v14 = vsel %vm17_vm2, %v83_v5, %v14_v13 }
  0x17   :  { %v23_v15 = vsel %vm20_vm3, %v22_v11, %v18_v14 }
  0x18   :  { %v24_v16 = vmul.f32 %v23_v15, %v8_v12 }
  0x1a   :  { %v25_v17 = vmul.f32 %v24_v16, %v24_v16 }
  0x1c   :  { %v26_v18 = vmul.f32 0.002785687, %v25_v17 }
  0x1e   :  { %v27_v19 = vadd.f32 -0.015866, %v26_v18 }
  0x20   :  { %v28_v20 = vmul.f32 %v27_v19, %v25_v17 }
  0x22   :  { %v29_v21 = vadd.f32 0.04247222, %v28_v20 }
  0x24   :  { %v30_v22 = vmul.f32 %v29_v21, %v25_v17 }
  0x26   :  { %v31_v25 = vadd.f32 -0.074975304, %v30_v22 }
  0x28   :  { %v32_v26 = vmul.f32 %v31_v25, %v25_v17 }
  0x2a   :  { %v33_v27 = vadd.f32 0.1064488, %v32_v26 }
  0x2c   :  { %v34_v28 = vmul.f32 %v33_v27, %v25_v17 }
  0x2e   :  { %v35_v29 = vadd.f32 -0.14207031, %v34_v28 }
  0x30   :  { %v36_v30 = vmul.f32 %v35_v29, %v25_v17 }
  0x32   :  { %v37_v31 = vadd.f32 0.19993454, %v36_v30 }
  0x34   :  { %v38_v32 = vmul.f32 %v37_v31, %v25_v17 }
  0x36   :  { %v39_v33 = vadd.f32 -0.33333147, %v38_v32 }
  0x38   :  { %v40_v34 = vmul.f32 %v39_v33, %v25_v17 }
  0x3a   :  { %v41_v35 = vmul.f32 %v40_v34, %v24_v16 }
  0x3c   :  { %v42_v36 = vadd.f32 %v41_v35, %v24_v16 }
  0x3e   :  { %v44_v37 = vsub.f32 1.5707964, %v42_v36 }
  0x40   :  { %v45_v38 = vsel %vm43_vm10, %v44_v37, %v42_v36 }
  0x41   :  { %v47_v39 = vsub.f32 3.1415927, %v45_v38 }
  0x43   :  { %v48_v42 = vsel %vm46_vm12, %v47_v39, %v45_v38 }
  0x44   :  { %v52_v45 = vsel %vm51_vm13, %v50_v41, %v48_v42 }
  0x45   :  { %v56_v46 = vsel %vm139_vm6, nan, %v52_v45 }
  0x46   :  { %v62_v48 = vsel %vm143_vm9, %v58_v44, %v56_v46 }
  0x47   :  { %v63_v49 = vand.u32 2147483647, %v62_v48 }
  0x49   :  { %v65_v50 = vor.u32 %v64_v47, %v63_v49 }
  0x4b   :  { %66 = vst [vmem:[#allocation0] sm:$0x1] %v65_v50 }
  0x4c   :  { %75 = dma.vmem_to_hbm [thread:$0]  %s71_s12, 16, %s73_s2, [#allocation1]  }
  0x4d   :  { %108 = dma.done.wait [#allocation1], 16  }
  0x4e   :  { %109 = vsyncadd [#allocation1], 4294967280 }
  0x4f   :  { %78 = vsyncpa [#allocation1], 1 }

// kernel: net_forward.1
= control target key start
LH: loop header
LB: loop body
LE: loop exit
PB: predicated region body
PF: predicated region fallthrough
CT: control target
= control target key end

     0   :  { %v1884_v0 = vmov 0   ;;  %v1885_v2 = vmov 1   ;;  %v1886_v49 = vmov 128.0   ;;  %s1889_s25 = smov 127   ;;  %s3107_s0 = inlined_call_operand.vmem [shape: f32[64,2], index: 0, kind: input, shape index: {}]   ;;  %s3108_s1 = inlined_call_operand.vmem [shape: f32[2,256], index: 1, kind: input, shape index: {}]   ;;  %s3109_s2 = inlined_call_operand.vmem [shape: f32[1,256], index: 2, kind: input, shape index: {}]   ;;  %s3110_s5 = inlined_call_operand.vmem [shape: f32[1,128], index: 5, kind: input, shape index: {}]   ;;  %s3111_s6 = inlined_call_operand.vmem [shape: f32[1,128], index: 6, kind: input, shape index: {}]   ;;  %s3112_s3 = inlined_call_operand.vmem [shape: bf16[128,256], index: 3, kind: input, shape index: {}]   ;;  %s3113_s4 = inlined_call_operand.vmem [shape: f32[1,256], index: 4, kind: input, shape index: {}]   ;;  %s3114_s7 = inlined_call_operand.vmem [shape: f32[128,256], index: 7, kind: input, shape index: {}]   ;;  %s3115_s9 = inlined_call_operand.vmem [shape: f32[256,256], index: 9, kind: input, shape index: {}]   ;;  %s3116_s8 = inlined_call_operand.vmem [shape: f32[1,256], index: 8, kind: input, shape index: {}]   ;;  %s3117_s12 = inlined_call_operand.vmem [shape: f32[128,8], index: 12, kind: input, shape index: {}]   ;;  %s3118_s11 = inlined_call_operand.vmem [shape: f32[128,8], index: 11, kind: input, shape index: {}]   ;;  %s3119_s10 = inlined_call_operand.vmem [shape: f32[1,256], index: 10, kind: input, shape index: {}]   ;;  %s3120_s13 = inlined_call_operand.vmem [shape: f32[1,8], index: 13, kind: input, shape index: {}]   ;;  %s3121_s14 = inlined_call_operand.vmem [shape: f32[64,8], index: 14, kind: output, shape index: {}]  }
   0x1   :  { %1768 = vset.pattern.permute.xlu0 %v1884_v0  ;;  %v47_v1 = vld [vmem:[%s3107_s0] sm:$0xff]  ;;  %1770 = vset.pattern.permute.xlu2 %v1884_v0  ;;  %v1734_v38 = vld [vmem:[%s3112_s3 + $0x70] sm:$0xf]  ;;  %v1761_v39 = vld [vmem:[%s3112_s3 + $0x74] sm:$0xf0] }
   0x2   :  { %60 = vperm.xlu0 %1768, %v47_v1   ;;  %1773 = vset.pattern.permute.xlu1 %v1885_v2  ;;  %v57_v4 = vld [vmem:[%s3108_s1] ss:$2 sm:$0x3]  ;;  %v1674_v5 = vld [vmem:[%s3108_s1 + $0x1] ss:$2 sm:$0x3]  ;;  %v2014_v41 = vor.u32 %v1761_v39, %v1734_v38 }
   0x3   :  { %v1979_v6 = vperm.slane %v57_v4, 1  ;;  %v1981_v7 = vperm.slane %v1674_v5, 1  ;;  %v190_v8 = vld [vmem:[%s3109_s2] sm:$0x3]  ;;  %v1991_v16 = vperm.slane %v1674_v5, 0  ;;  %v1993_v17 = vperm.slane %v57_v4, 0 }
   0x4   :  { %v1987_v11 = vperm.slane %v190_v8, 1  ;;  %v1997_v22 = vperm.slane %v190_v8, 0  ;;  %v1760_v40 = vld [vmem:[%s3112_s3 + $0x74] sm:$0xf]  ;;  %v1736_v42 = vld [vmem:[%s3112_s3 + $0x78] sm:$0xf0]  ;;  %437 = vmatpush.bf16.msra.mxu0 %v2014_v41  ;;  %517 = vmatpush.bf16.msra.mxu2 %v2014_v41 }
   0x5   :  { %v2019_v43 = vor.u32 %v1760_v40, %v1736_v42  ;;  %v1726_v44 = vld [vmem:[%s3112_s3 + $0x60] sm:$0xf]  ;;  %v1759_v45 = vld [vmem:[%s3112_s3 + $0x64] sm:$0xf0]  ;;  %v1758_v46 = vld [vmem:[%s3112_s3 + $0x64] sm:$0xf] }
   0x6   :  { %v2034_v47 = vor.u32 %v1759_v45, %v1726_v44  ;;  %v1728_v48 = vld [vmem:[%s3112_s3 + $0x68] sm:$0xf0]  ;;  %v1718_v51 = vld [vmem:[%s3112_s3 + $0x50] sm:$0xf]  ;;  %v1757_v52 = vld [vmem:[%s3112_s3 + $0x54] sm:$0xf0] }
   0x7   :  { %450 = vmatpush.bf16.msra.mxu1 %v2019_v43  ;;  %530 = vmatpush.bf16.msra.mxu3 %v2019_v43  ;;  %v2039_v50 = vor.u32 %v1758_v46, %v1728_v48  ;;  %v1756_v53 = vld [vmem:[%s3112_s3 + $0x54] sm:$0xf]  ;;  %v2054_v54 = vor.u32 %v1757_v52, %v1718_v51  ;;  %v1720_v55 = vld [vmem:[%s3112_s3 + $0x58] sm:$0xf0]  ;;  %v1710_v58 = vld [vmem:[%s3112_s3 + $0x40] sm:$0xf] }
   0x8   :  { %438 = vmatpush.bf16.msra.mxu0 %v2034_v47  ;;  %518 = vmatpush.bf16.msra.mxu2 %v2034_v47  ;;  %v2059_v56 = vor.u32 %v1756_v53, %v1720_v55  ;;  %v1755_v59 = vld [vmem:[%s3112_s3 + $0x44] sm:$0xf0]  ;;  %v1754_v60 = vld [vmem:[%s3112_s3 + $0x44] sm:$0xf]  ;;  %v1712_v62 = vld [vmem:[%s3112_s3 + $0x48] sm:$0xf0] }
   0x9   :  { %v2074_v61 = vor.u32 %v1755_v59, %v1710_v58  ;;  %v2079_v63 = vor.u32 %v1754_v60, %v1712_v62  ;;  %v1753_v4 = vld [vmem:[%s3112_s3 + $0x34] sm:$0xf0]  ;;  %v1752_v5 = vld [vmem:[%s3112_s3 + $0x34] sm:$0xf]  ;;  %v48_v40 = vld [vmem:[%s3107_s0 + $0x8] sm:$0xff] }
   0xa   :  { %1769 = vset.pattern.permute.xlu0 %v1885_v2  ;;  %65 = vperm.xlu2 %1770, %v48_v40  }
   0xb   :  { %122 = vperm.xlu0 %1769, %v47_v1   ;;  %451 = vmatpush.bf16.msra.mxu1 %v2039_v50 }
   0xc   :  { %531 = vmatpush.bf16.msra.mxu3 %v2039_v50  ;;  %439 = vmatpush.bf16.msra.mxu0 %v2054_v54 }
   0xd   :  { %519 = vmatpush.bf16.msra.mxu2 %v2054_v54 }
   0xf   :  { %452 = vmatpush.bf16.msra.mxu1 %v2059_v56 }
  0x10   :  { %532 = vmatpush.bf16.msra.mxu3 %v2059_v56  ;;  %440 = vmatpush.bf16.msra.mxu0 %v2074_v61 }
  0x11   :  { %520 = vmatpush.bf16.msra.mxu2 %v2074_v61 }
  0x12   :  { %1771 = vset.pattern.permute.xlu2 %v1885_v2 }
  0x13   :  { %1772 = vset.pattern.permute.xlu0 %v1884_v0  ;;  %453 = vmatpush.bf16.msra.mxu1 %v2079_v63 }
  0x14   :  { %533 = vmatpush.bf16.msra.mxu3 %v2079_v63  ;;  %126 = vperm.xlu2 %1771, %v48_v40  }
  0x1c   :  { %1774 = vset.pattern.permute.xlu2 %v1884_v0 }
  0x74   :  { %v61_v3 = vpop.permute.xlu0 %60 }
  0x75   :  { %v104_v10 = vmul.f32 %v1979_v6, %v61_v3  ;;  %v103_v21 = vmul.f32 %v1993_v17, %v61_v3  ;;  %v1702_v3 = vld [vmem:[%s3112_s3 + $0x30] sm:$0xf] }
  0x76   :  { %v2094_v8 = vor.u32 %v1753_v4, %v1702_v3 }
  0x78   :  { %441 = vmatpush.bf16.msra.mxu0 %v2094_v8  ;;  %521 = vmatpush.bf16.msra.mxu2 %v2094_v8 }
  0x7d   :  { %v123_v9 = vpop.permute.xlu0 %122 }
  0x7e   :  { %v159_v12 = vmul.f32 %v1981_v7, %v123_v9  ;;  %v158_v19 = vmul.f32 %v1991_v16, %v123_v9  ;;  %v1704_v9 = vld [vmem:[%s3112_s3 + $0x38] sm:$0xf0] }
  0x80   :  { %v175_v13 = vadd.f32 %v159_v12, %v104_v10  ;;  %v174_v23 = vadd.f32 %v158_v19, %v103_v21  ;;  %v2099_v10 = vor.u32 %v1752_v5, %v1704_v9  ;;  %v1696_v19 = vld [vmem:[%s3112_s3 + $0x28] sm:$0xf0]  ;;  %v242_v9 = vld [vmem:[%s3113_s4] sm:$0x3] }
  0x82   :  { %v197_v14 = vadd.f32 %v1987_v11, %v175_v13  ;;  %v196_v25 = vadd.f32 %v1997_v22, %v174_v23  ;;  %454 = vmatpush.bf16.msra.mxu1 %v2099_v10  ;;  %v1694_v13 = vld [vmem:[%s3112_s3 + $0x20] sm:$0xf]  ;;  %534 = vmatpush.bf16.msra.mxu3 %v2099_v10  ;;  %v1686_v23 = vld [vmem:[%s3112_s3 + $0x10] sm:$0xf] }
  0x84   :  { %v1675_v15 = vmul.f32 -1.442695, %v197_v14  ;;  %v1751_v14 = vld [vmem:[%s3112_s3 + $0x24] sm:$0xf0] }
  0x86   :  { %1785 = vpow2.f32 %v1675_v15  ;;  %v1750_v15 = vld [vmem:[%s3112_s3 + $0x24] sm:$0xf] }
  0x8c   :  { %v1786_v18 = vpop.eup %1785 }
  0x8d   :  { %v283_v20 = vadd.f32 1.0, %v1786_v18  ;;  %v2114_v18 = vor.u32 %v1751_v14, %v1694_v13  ;;  %v2229_v13 = vperm.slane %v242_v9, 1 }
  0x8f   :  { %1787 = vrcp.f32 %v283_v20  ;;  %v295_v28 = vand.u32 2147483648, %v283_v20  ;;  %v293_v30 = vand.u32 2147483647, %v283_v20  ;;  %vm289_vm1 = vweird.f32 %v283_v20  ;;  %442 = vmatpush.bf16.msra.mxu0 %v2114_v18  ;;  %522 = vmatpush.bf16.msra.mxu2 %v2114_v18 }
  0x90   :  { %1789 = vtanh.f32 %v196_v25  ;;  %v1748_v25 = vld [vmem:[%s3112_s3 + $0x14] sm:$0xf] }
  0x91   :  { %v296_v32 = vor.u32 1.1754944e-38, %v295_v28  ;;  %vm294_vm3 = vcmp.eq.f32.partialorder %v293_v30, 8.507059e+37  ;;  %1791 = vrcp.f32 %v1886_v49  ;;  %v1678_v28 = vld [vmem:[%s3112_s3] sm:$0xf] }
  0x95   :  { %v1788_v24 = vpop.eup %1787 }
  0x96   :  { %v285_v26 = vmul.f32 %v1788_v24, %v283_v20  ;;  %vm290_vm0 = vweird.f32 %v1788_v24  ;;  %v1790_v34 = vpop.eup %1789  ;;  %v2119_v20 = vor.u32 %v1750_v15, %v1696_v19 }
  0x97   :  { %vm291_vm2 = vmor %vm289_vm1, %vm290_vm0  ;;  %v1792_v57 = vpop.eup %1791 }
  0x98   :  { %v286_v27 = vsub.f32 1.0, %v285_v26  ;;  %v303_v1 = vmul.f32 128.0, %v1792_v57  ;;  %455 = vmatpush.bf16.msra.mxu1 %v2119_v20  ;;  %535 = vmatpush.bf16.msra.mxu3 %v2119_v20  ;;  %vm307_vm4 = vweird.f32 %v1792_v57 }
  0x9a   :  { %v287_v29 = vmul.f32 %v1788_v24, %v286_v27  ;;  %v304_v12 = vsub.f32 1.0, %v303_v1  ;;  %v1688_v27 = vld [vmem:[%s3112_s3 + $0x18] sm:$0xf0] }
  0x9b   :  { %v2145_v30 = vor.u32 %v1748_v25, %v1688_v27 }
  0x9c   :  { %v288_v31 = vadd.f32 %v1788_v24, %v287_v29  ;;  %v305_v21 = vmul.f32 %v1792_v57, %v304_v12  ;;  %v1747_v29 = vld [vmem:[%s3112_s3 + $0x4] sm:$0xf0] }
  0x9d   :  { %456 = vmatpush.bf16.msra.mxu1 %v2145_v30  ;;  %536 = vmatpush.bf16.msra.mxu3 %v2145_v30 }
  0x9e   :  { %v292_v33 = vsel %vm291_vm2, %v1788_v24, %v288_v31  ;;  %v1749_v24 = vld [vmem:[%s3112_s3 + $0x14] sm:$0xf0]  ;;  %v1746_v31 = vld [vmem:[%s3112_s3 + $0x4] sm:$0xf] }
  0x9f   :  { %v297_v35 = vsel %vm294_vm3, %v296_v32, %v292_v33  ;;  %v2134_v26 = vor.u32 %v1749_v24, %v1686_v23  ;;  %v1680_v32 = vld [vmem:[%s3112_s3 + $0x8] sm:$0xf0]  ;;  %v306_v33 = vadd.f32 %v1792_v57, %v305_v21 }
  0xa0   :  { %v2000_v36 = vmul.f32 %v1790_v34, %v297_v35  ;;  %v2154_v34 = vor.u32 %v1747_v29, %v1678_v28  ;;  %v2158_v35 = vor.u32 %v1746_v31, %v1680_v32 }
  0xa1   :  { %443 = vmatpush.bf16.msra.mxu0 %v2134_v26  ;;  %523 = vmatpush.bf16.msra.mxu2 %v2134_v26  ;;  %v2161_v38 = vsel %vm307_vm4, %v1792_v57, %v306_v33 }
  0xa2   :  { %300 = vadd.xlane.f32.xlu1 %v2000_v36  ;;  %v310_v37 = vmul.f32 %v2000_v36, %v2000_v36  ;;  %457 = vmatpush.bf16.msra.mxu1 %v2158_v35 }
  0xa3   :  { %537 = vmatpush.bf16.msra.mxu3 %v2158_v35 }
  0xa5   :  { %444 = vmatpush.bf16.msra.mxu0 %v2154_v34  ;;  %524 = vmatpush.bf16.msra.mxu2 %v2154_v34 }
  0xa6   :  { %610 = vmatpush.bf16.msrb.mxu1 %v2019_v43 }
  0xa7   :  { %690 = vmatpush.bf16.msrb.mxu3 %v2019_v43 }
  0xa9   :  { %597 = vmatpush.bf16.msrb.mxu0 %v2014_v41  ;;  %677 = vmatpush.bf16.msrb.mxu2 %v2014_v41 }
  0xaa   :  { %311 = vadd.xlane.f32.xlu1 %v310_v37  ;;  %611 = vmatpush.bf16.msrb.mxu1 %v2039_v50 }
  0xab   :  { %691 = vmatpush.bf16.msrb.mxu3 %v2039_v50 }
  0xad   :  { %598 = vmatpush.bf16.msrb.mxu0 %v2034_v47  ;;  %678 = vmatpush.bf16.msrb.mxu2 %v2034_v47 }
  0xae   :  { %612 = vmatpush.bf16.msrb.mxu1 %v2059_v56 }
  0xaf   :  { %692 = vmatpush.bf16.msrb.mxu3 %v2059_v56 }
  0xb1   :  { %599 = vmatpush.bf16.msrb.mxu0 %v2054_v54  ;;  %679 = vmatpush.bf16.msrb.mxu2 %v2054_v54 }
  0xb2   :  { %613 = vmatpush.bf16.msrb.mxu1 %v2079_v63 }
  0xb3   :  { %693 = vmatpush.bf16.msrb.mxu3 %v2079_v63 }
  0xb5   :  { %600 = vmatpush.bf16.msrb.mxu0 %v2074_v61  ;;  %680 = vmatpush.bf16.msrb.mxu2 %v2074_v61 }
  0xb6   :  { %614 = vmatpush.bf16.msrb.mxu1 %v2099_v10 }
  0xb7   :  { %694 = vmatpush.bf16.msrb.mxu3 %v2099_v10 }
  0xb9   :  { %601 = vmatpush.bf16.msrb.mxu0 %v2094_v8  ;;  %681 = vmatpush.bf16.msrb.mxu2 %v2094_v8 }
  0xba   :  { %615 = vmatpush.bf16.msrb.mxu1 %v2119_v20 }
  0xbb   :  { %695 = vmatpush.bf16.msrb.mxu3 %v2119_v20 }
  0xbd   :  { %602 = vmatpush.bf16.msrb.mxu0 %v2114_v18  ;;  %682 = vmatpush.bf16.msrb.mxu2 %v2114_v18 }
  0xbe   :  { %616 = vmatpush.bf16.msrb.mxu1 %v2145_v30 }
  0xbf   :  { %696 = vmatpush.bf16.msrb.mxu3 %v2145_v30 }
  0xc1   :  { %603 = vmatpush.bf16.msrb.mxu0 %v2134_v26  ;;  %683 = vmatpush.bf16.msrb.mxu2 %v2134_v26 }
  0xc2   :  { %617 = vmatpush.bf16.msrb.mxu1 %v2158_v35 }
  0xc3   :  { %697 = vmatpush.bf16.msrb.mxu3 %v2158_v35 }
  0xc5   :  { %604 = vmatpush.bf16.msrb.mxu0 %v2154_v34  ;;  %684 = vmatpush.bf16.msrb.mxu2 %v2154_v34 }
 0x115   :  { %v301_v37 = vpop.xlane.xlu1 %300 }
 0x116   :  { %v309_v39 = vmul.f32 %v2161_v38, %v301_v37  ;;  %v2235_v37 = vperm.slane %v242_v9, 0  ;;  %v49_v9 = vld [vmem:[%s3107_s0 + $0x10] sm:$0xff] }
 0x117   :  { %70 = vperm.xlu0 %1772, %v49_v9  }
 0x118   :  { %v314_v44 = vmul.f32 %v309_v39, %v309_v39  ;;  %v316_v58 = vsub.f32 %v2000_v36, %v309_v39  ;;  %v66_v36 = vpop.permute.xlu2 %65 }
 0x119   :  { %v106_v3 = vmul.f32 %v1979_v6, %v66_v36  ;;  %v105_v24 = vmul.f32 %v1993_v17, %v66_v36 }
 0x11d   :  { %v312_v42 = vpop.xlane.xlu1 %311 }
 0x11e   :  { %v313_v45 = vmul.f32 %v312_v42, %v2161_v38 }
 0x120   :  { %v315_v46 = vsub.f32 %v313_v45, %v314_v44  ;;  %v127_v1 = vpop.permute.xlu2 %126  ;;  %v2241_v45 = vld [vmem:[%s3110_s5] ss:$0 sm:$0xff] }
 0x121   :  { %v161_v4 = vmul.f32 %v1981_v7, %v127_v1  ;;  %v160_v25 = vmul.f32 %v1991_v16, %v127_v1 }
 0x122   :  { %v317_v48 = vadd.f32 1e-05, %v315_v46 }
 0x123   :  { %v177_v5 = vadd.f32 %v161_v4, %v106_v3  ;;  %v176_v31 = vadd.f32 %v160_v25, %v105_v24 }
 0x124   :  { %1793 = vrsqrt.f32 %v317_v48  ;;  %vm324_vm6 = vweird.f32 %v317_v48 }
 0x125   :  { %v199_v12 = vadd.f32 %v1987_v11, %v177_v5  ;;  %v198_v33 = vadd.f32 %v1997_v22, %v176_v31 }
 0x127   :  { %v249_v14 = vadd.f32 %v2229_v13, %v199_v12  ;;  %v248_v40 = vadd.f32 %v2235_v37, %v198_v33 }
 0x12a   :  { %v1794_v49 = vpop.eup %1793 }
 0x12b   :  { %v319_v51 = vmul.f32 %v1794_v49, %v317_v48  ;;  %vm325_vm5 = vweird.f32 %v1794_v49 }
 0x12c   :  { %vm326_vm7 = vmor %vm324_vm6, %vm325_vm5 }
 0x12d   :  { %v320_v52 = vmul.f32 %v1794_v49, %v319_v51 }
 0x12f   :  { %v321_v53 = vmul.f32 0.5, %v320_v52 }
 0x131   :  { %v322_v55 = vsub.f32 1.5, %v321_v53  ;;  %v2247_v53 = vld [vmem:[%s3111_s6] ss:$0 sm:$0xff] }
 0x133   :  { %v323_v57 = vmul.f32 %v1794_v49, %v322_v55 }
 0x135   :  { %v327_v59 = vsel %vm326_vm7, %v1794_v49, %v323_v57 }
 0x136   :  { %v328_v60 = vmul.f32 %v327_v59, %v316_v58 }
 0x138   :  { %v356_v62 = vpack.c.bf16 %v328_v60, %v328_v60  ;;  %v332_v52 = vmul.f32 %v2241_v45, %v328_v60 }
 0x13a   :  { %445 = vmatmul.bf16.vlgmr.msra.gmra.mxu0 %v356_v62  ;;  %458 = vmatmul.bf16.vlgmr.msra.gmra.mxu1 %v356_v62  ;;  %v2250_v62 = vadd.f32 %v2247_v53, %v332_v52 }
 0x13b   :  { %757 = vmatpush.bf16.msra.mxu0 %v2014_v41  ;;  %770 = vmatpush.bf16.msra.mxu1 %v2019_v43 }
 0x13f   :  { %758 = vmatpush.bf16.msra.mxu0 %v2034_v47  ;;  %771 = vmatpush.bf16.msra.mxu1 %v2039_v50 }
 0x143   :  { %759 = vmatpush.bf16.msra.mxu0 %v2054_v54  ;;  %772 = vmatpush.bf16.msra.mxu1 %v2059_v56 }
 0x147   :  { %760 = vmatpush.bf16.msra.mxu0 %v2074_v61  ;;  %773 = vmatpush.bf16.msra.mxu1 %v2079_v63 }
 0x14b   :  { %761 = vmatpush.bf16.msra.mxu0 %v2094_v8  ;;  %774 = vmatpush.bf16.msra.mxu1 %v2099_v10 }
 0x14f   :  { %762 = vmatpush.bf16.msra.mxu0 %v2114_v18  ;;  %775 = vmatpush.bf16.msra.mxu1 %v2119_v20 }
 0x153   :  { %763 = vmatpush.bf16.msra.mxu0 %v2134_v26  ;;  %776 = vmatpush.bf16.msra.mxu1 %v2145_v30 }
 0x157   :  { %764 = vmatpush.bf16.msra.mxu0 %v2154_v34  ;;  %777 = vmatpush.bf16.msra.mxu1 %v2158_v35 }
 0x1b7   :  { %v446_v15 = vpop.f32.mrf.mxu0  ;;  %v459_v19 = vpop.f32.mrf.mxu1 }
 0x1b8   :  { %v464_v21 = vadd.f32 %v459_v19, %v249_v14  ;;  %v463_v44 = vadd.f32 %v446_v15, %v248_v40 }
 0x1ba   :  { %v1740_v23 = vmul.f32 -1.442695, %v464_v21 }
 0x1bc   :  { %1795 = vpow2.f32 %v1740_v23 }
 0x1bf   :  { %v448_v27 = vpop.f32.mrf.mxu0  ;;  %v461_v28 = vpop.f32.mrf.mxu1 }
 0x1c2   :  { %v1796_v29 = vpop.eup %1795 }
 0x1c3   :  { %v469_v32 = vadd.f32 1.0, %v1796_v29 }
 0x1c5   :  { %1797 = vrcp.f32 %v469_v32  ;;  %v481_v48 = vand.u32 2147483648, %v469_v32  ;;  %v479_v51 = vand.u32 2147483647, %v469_v32  ;;  %vm475_vm9 = vweird.f32 %v469_v32 }
 0x1c6   :  { %1799 = vtanh.f32 %v463_v44 }
 0x1c7   :  { %v482_v57 = vor.u32 1.1754944e-38, %v481_v48  ;;  %vm480_vm11 = vcmp.eq.f32.partialorder %v479_v51, 8.507059e+37 }
 0x1cb   :  { %v1798_v39 = vpop.eup %1797 }
 0x1cc   :  { %v471_v42 = vmul.f32 %v1798_v39, %v469_v32  ;;  %vm476_vm8 = vweird.f32 %v1798_v39  ;;  %v1800_v1 = vpop.eup %1799 }
 0x1cd   :  { %vm477_vm10 = vmor %vm475_vm9, %vm476_vm8 }
 0x1ce   :  { %v472_v46 = vsub.f32 1.0, %v471_v42 }
 0x1d0   :  { %v473_v49 = vmul.f32 %v1798_v39, %v472_v46 }
 0x1d2   :  { %v474_v55 = vadd.f32 %v1798_v39, %v473_v49 }
 0x1d4   :  { %v478_v58 = vsel %vm477_vm10, %v1798_v39, %v474_v55 }
 0x1d5   :  { %v483_v59 = vsel %vm480_vm11, %v482_v57, %v478_v58 }
 0x1d6   :  { %v485_v36 = vsub.f32 1.0, %v483_v59  ;;  %v487_v60 = vmul.f32 %v1800_v1, %v483_v59 }
 0x1d8   :  { %v486_v3 = vmul.f32 %v485_v36, %v2250_v62 }
 0x1da   :  { %v488_v4 = vadd.f32 %v487_v60, %v486_v3 }
 0x1dc   :  { %489 = vadd.xlane.f32.xlu1 %v488_v4  ;;  %v492_v5 = vmul.f32 %v488_v4, %v488_v4 }
 0x1de   :  { %493 = vadd.xlane.f32.xlu2 %v492_v5 }
 0x1f5   :  { %130 = vperm.xlu1 %1773, %v49_v9  }
 0x24f   :  { %v490_v12 = vpop.xlane.xlu1 %489 }
 0x250   :  { %v491_v14 = vmul.f32 %v490_v12, %v2161_v38 }
 0x251   :  { %v494_v15 = vpop.xlane.xlu2 %493 }
 0x252   :  { %v496_v19 = vmul.f32 %v491_v14, %v491_v14  ;;  %v495_v21 = vmul.f32 %v494_v15, %v2161_v38  ;;  %v498_v33 = vsub.f32 %v488_v4, %v491_v14 }
 0x254   :  { %v497_v23 = vsub.f32 %v495_v21, %v496_v19 }
 0x256   :  { %v499_v24 = vadd.f32 1e-05, %v497_v23 }
 0x258   :  { %1801 = vrsqrt.f32 %v499_v24  ;;  %vm506_vm13 = vweird.f32 %v499_v24 }
 0x25e   :  { %v1802_v25 = vpop.eup %1801 }
 0x25f   :  { %v501_v27 = vmul.f32 %v1802_v25, %v499_v24  ;;  %vm507_vm12 = vweird.f32 %v1802_v25  ;;  %v2290_v24 = vld [vmem:[%s3107_s0 + $0x20] sm:$0xff] }
 0x260   :  { %vm508_vm14 = vmor %vm506_vm13, %vm507_vm12 }
 0x261   :  { %v502_v28 = vmul.f32 %v1802_v25, %v501_v27 }
 0x263   :  { %v503_v29 = vmul.f32 0.5, %v502_v28 }
 0x265   :  { %v504_v31 = vsub.f32 1.5, %v503_v29 }
 0x267   :  { %v505_v32 = vmul.f32 %v1802_v25, %v504_v31 }
 0x269   :  { %v509_v39 = vsel %vm508_vm14, %v1802_v25, %v505_v32  ;;  %v50_v25 = vld [vmem:[%s3107_s0 + $0x18] sm:$0xff] }
 0x26a   :  { %v510_v40 = vmul.f32 %v509_v39, %v498_v33  ;;  %75 = vperm.xlu2 %1774, %v50_v25  }
 0x26c   :  { %v516_v42 = vpack.c.bf16 %v510_v40, %v510_v40  ;;  %v511_v1 = vmul.f32 %v2241_v45, %v510_v40 }
 0x26e   :  { %525 = vmatmul.bf16.vlgmr.msra.gmra.mxu2 %v516_v42  ;;  %538 = vmatmul.bf16.vlgmr.msra.gmra.mxu3 %v516_v42  ;;  %v2284_v9 = vadd.f32 %v2247_v53, %v511_v1 }
 0x26f   :  { %837 = vmatpush.bf16.msra.mxu2 %v2014_v41  ;;  %850 = vmatpush.bf16.msra.mxu3 %v2019_v43  ;;  %v131_v41 = vpop.permute.xlu1 %130  ;;  %v71_v43 = vpop.permute.xlu0 %70 }
 0x272   :  { %1775 = vset.pattern.permute.xlu2 %v1885_v2 }
 0x273   :  { %838 = vmatpush.bf16.msra.mxu2 %v2034_v47  ;;  %851 = vmatpush.bf16.msra.mxu3 %v2039_v50  ;;  %v163_v47 = vmul.f32 %v1981_v7, %v131_v41  ;;  %v108_v50 = vmul.f32 %v1979_v6, %v71_v43 }
 0x274   :  { %134 = vperm.xlu2 %1775, %v50_v25  }
 0x277   :  { %839 = vmatpush.bf16.msra.mxu2 %v2054_v54  ;;  %852 = vmatpush.bf16.msra.mxu3 %v2059_v56  ;;  %v179_v54 = vadd.f32 %v163_v47, %v108_v50 }
 0x279   :  { %v201_v56 = vadd.f32 %v1987_v11, %v179_v54 }
 0x27b   :  { %840 = vmatpush.bf16.msra.mxu2 %v2074_v61  ;;  %853 = vmatpush.bf16.msra.mxu3 %v2079_v63  ;;  %v251_v61 = vadd.f32 %v2229_v13, %v201_v56 }
 0x27c   :  { %1776 = vset.pattern.permute.xlu2 %v1884_v0 }
 0x27f   :  { %841 = vmatpush.bf16.msra.mxu2 %v2094_v8  ;;  %854 = vmatpush.bf16.msra.mxu3 %v2099_v10 }
 0x283   :  { %842 = vmatpush.bf16.msra.mxu2 %v2114_v18  ;;  %855 = vmatpush.bf16.msra.mxu3 %v2119_v20  ;;  %v162_v20 = vmul.f32 %v1991_v16, %v131_v41 }
 0x287   :  { %843 = vmatpush.bf16.msra.mxu2 %v2134_v26  ;;  %856 = vmatpush.bf16.msra.mxu3 %v2145_v30  ;;  %v107_v26 = vmul.f32 %v1993_v17, %v71_v43 }
 0x28b   :  { %844 = vmatpush.bf16.msra.mxu2 %v2154_v34  ;;  %857 = vmatpush.bf16.msra.mxu3 %v2158_v35  ;;  %v178_v35 = vadd.f32 %v162_v20, %v107_v26 }
 0x28d   :  { %v200_v48 = vadd.f32 %v1997_v22, %v178_v35 }
 0x28f   :  { %v250_v49 = vadd.f32 %v2235_v37, %v200_v48 }
 0x2f1   :  { %v526_v63 = vpop.f32.mrf.mxu2  ;;  %v539_v8 = vpop.f32.mrf.mxu3 }
 0x2f2   :  { %v544_v10 = vadd.f32 %v539_v8, %v251_v61  ;;  %v543_v55 = vadd.f32 %v526_v63, %v250_v49  ;;  %v76_v8 = vpop.permute.xlu2 %75 }
 0x2f3   :  { %v109_v49 = vmul.f32 %v1993_v17, %v76_v8 }
 0x2f4   :  { %v1741_v18 = vmul.f32 -1.442695, %v544_v10 }
 0x2f6   :  { %1803 = vpow2.f32 %v1741_v18  ;;  %v110_v18 = vmul.f32 %v1979_v6, %v76_v8 }
 0x2f9   :  { %v528_v30 = vpop.f32.mrf.mxu2  ;;  %v541_v34 = vpop.f32.mrf.mxu3 }
 0x2fa   :  { %v135_v10 = vpop.permute.xlu2 %134 }
 0x2fb   :  { %v165_v20 = vmul.f32 %v1981_v7, %v135_v10 }
 0x2fc   :  { %v1804_v44 = vpop.eup %1803 }
 0x2fd   :  { %v549_v46 = vadd.f32 1.0, %v1804_v44  ;;  %v181_v26 = vadd.f32 %v165_v20, %v110_v18 }
 0x2ff   :  { %1805 = vrcp.f32 %v549_v46  ;;  %v561_v58 = vand.u32 2147483648, %v549_v46  ;;  %v559_v36 = vand.u32 2147483647, %v549_v46  ;;  %vm555_vm0 = vweird.f32 %v549_v46 }
 0x300   :  { %1807 = vtanh.f32 %v543_v55  ;;  %v203_v30 = vadd.f32 %v1987_v11, %v181_v26 }
 0x301   :  { %v562_v60 = vor.u32 1.1754944e-38, %v561_v58  ;;  %vm560_vm2 = vcmp.eq.f32.partialorder %v559_v36, 8.507059e+37 }
 0x302   :  { %v253_v34 = vadd.f32 %v2229_v13, %v203_v30 }
 0x305   :  { %v1806_v51 = vpop.eup %1805 }
 0x306   :  { %v551_v52 = vmul.f32 %v1806_v51, %v549_v46  ;;  %vm556_vm15 = vweird.f32 %v1806_v51  ;;  %v1808_v14 = vpop.eup %1807 }
 0x307   :  { %vm557_vm1 = vmor %vm555_vm0, %vm556_vm15 }
 0x308   :  { %v552_v57 = vsub.f32 1.0, %v551_v52 }
 0x30a   :  { %v553_v59 = vmul.f32 %v1806_v51, %v552_v57 }
 0x30c   :  { %v554_v3 = vadd.f32 %v1806_v51, %v553_v59 }
 0x30e   :  { %v558_v4 = vsel %vm557_vm1, %v1806_v51, %v554_v3  ;;  %v164_v51 = vmul.f32 %v1991_v16, %v135_v10 }
 0x30f   :  { %v563_v5 = vsel %vm560_vm2, %v562_v60, %v558_v4 }
 0x310   :  { %v565_v12 = vsub.f32 1.0, %v563_v5  ;;  %v567_v19 = vmul.f32 %v1808_v14, %v563_v5  ;;  %v180_v58 = vadd.f32 %v164_v51, %v109_v49 }
 0x312   :  { %v566_v15 = vmul.f32 %v565_v12, %v2284_v9  ;;  %v202_v36 = vadd.f32 %v1997_v22, %v180_v58 }
 0x314   :  { %v568_v21 = vadd.f32 %v567_v19, %v566_v15  ;;  %v252_v3 = vadd.f32 %v2235_v37, %v202_v36 }
 0x316   :  { %569 = vadd.xlane.f32.xlu0 %v568_v21  ;;  %v572_v23 = vmul.f32 %v568_v21, %v568_v21 }
 0x318   :  { %573 = vadd.xlane.f32.xlu1 %v572_v23 }
 0x331   :  { %138 = vperm.xlu1 %1773, %v2290_v24  }
 0x339   :  { %1778 = vset.pattern.permute.xlu1 %v1884_v0 }
 0x389   :  { %v570_v27 = vpop.xlane.xlu0 %569 }
 0x38a   :  { %v571_v28 = vmul.f32 %v570_v27, %v2161_v38 }
 0x38b   :  { %v574_v29 = vpop.xlane.xlu1 %573 }
 0x38c   :  { %v576_v31 = vmul.f32 %v571_v28, %v571_v28  ;;  %v575_v32 = vmul.f32 %v574_v29, %v2161_v38  ;;  %v578_v54 = vsub.f32 %v568_v21, %v571_v28 }
 0x38e   :  { %v577_v33 = vsub.f32 %v575_v32, %v576_v31 }
 0x390   :  { %v579_v39 = vadd.f32 1e-05, %v577_v33 }
 0x392   :  { %1809 = vrsqrt.f32 %v579_v39  ;;  %vm586_vm4 = vweird.f32 %v579_v39 }
 0x398   :  { %v1810_v40 = vpop.eup %1809 }
 0x399   :  { %v581_v42 = vmul.f32 %v1810_v40, %v579_v39  ;;  %vm587_vm3 = vweird.f32 %v1810_v40 }
 0x39a   :  { %vm588_vm5 = vmor %vm586_vm4, %vm587_vm3 }
 0x39b   :  { %v582_v41 = vmul.f32 %v1810_v40, %v581_v42 }
 0x39d   :  { %v583_v43 = vmul.f32 0.5, %v582_v41 }
 0x39f   :  { %v584_v47 = vsub.f32 1.5, %v583_v43 }
 0x3a1   :  { %v585_v50 = vmul.f32 %v1810_v40, %v584_v47 }
 0x3a3   :  { %v589_v56 = vsel %vm588_vm5, %v1810_v40, %v585_v50 }
 0x3a4   :  { %v590_v61 = vmul.f32 %v589_v56, %v578_v54 }
 0x3a6   :  { %v596_v63 = vpack.c.bf16 %v590_v61, %v590_v61  ;;  %v591_v19 = vmul.f32 %v2241_v45, %v590_v61 }
 0x3a8   :  { %605 = vmatmul.bf16.vlgmr.msrb.gmra.mxu0 %v596_v63  ;;  %618 = vmatmul.bf16.vlgmr.msrb.gmra.mxu1 %v596_v63  ;;  %v2311_v28 = vadd.f32 %v2247_v53, %v591_v19 }
 0x425   :  { %v606_v35 = vpop.f32.mrf.mxu0  ;;  %v619_v44 = vpop.f32.mrf.mxu1 }
 0x426   :  { %v624_v46 = vadd.f32 %v619_v44, %v253_v34  ;;  %v623_v4 = vadd.f32 %v606_v35, %v252_v3  ;;  %v139_v44 = vpop.permute.xlu1 %138 }
 0x428   :  { %v1742_v48 = vmul.f32 -1.442695, %v624_v46 }
 0x42a   :  { %1811 = vpow2.f32 %v1742_v48  ;;  %v167_v48 = vmul.f32 %v1981_v7, %v139_v44 }
 0x42d   :  { %v608_v52 = vpop.f32.mrf.mxu0  ;;  %v621_v55 = vpop.f32.mrf.mxu1 }
 0x430   :  { %v1812_v57 = vpop.eup %1811 }
 0x431   :  { %v629_v59 = vadd.f32 1.0, %v1812_v57 }
 0x433   :  { %1813 = vrcp.f32 %v629_v59  ;;  %v641_v12 = vand.u32 2147483648, %v629_v59  ;;  %v639_v15 = vand.u32 2147483647, %v629_v59  ;;  %vm635_vm7 = vweird.f32 %v629_v59 }
 0x434   :  { %1815 = vtanh.f32 %v623_v4 }
 0x435   :  { %v642_v23 = vor.u32 1.1754944e-38, %v641_v12  ;;  %vm640_vm9 = vcmp.eq.f32.partialorder %v639_v15, 8.507059e+37 }
 0x439   :  { %v1814_v1 = vpop.eup %1813 }
 0x43a   :  { %v631_v60 = vmul.f32 %v1814_v1, %v629_v59  ;;  %vm636_vm6 = vweird.f32 %v1814_v1  ;;  %v1816_v31 = vpop.eup %1815 }
 0x43b   :  { %vm637_vm8 = vmor %vm635_vm7, %vm636_vm6 }
 0x43c   :  { %v632_v5 = vsub.f32 1.0, %v631_v60  ;;  %v166_v60 = vmul.f32 %v1991_v16, %v139_v44  ;;  %v942_v44 = vld [vmem:[%s3114_s7 + $0xa0] sm:$0xff] }
 0x43e   :  { %v633_v14 = vmul.f32 %v1814_v1, %v632_v5 }
 0x440   :  { %v634_v21 = vadd.f32 %v1814_v1, %v633_v14 }
 0x442   :  { %v638_v25 = vsel %vm637_vm8, %v1814_v1, %v634_v21 }
 0x443   :  { %v643_v27 = vsel %vm640_vm9, %v642_v23, %v638_v25 }
 0x444   :  { %v645_v29 = vsub.f32 1.0, %v643_v27  ;;  %v647_v33 = vmul.f32 %v1816_v31, %v643_v27 }
 0x446   :  { %v646_v32 = vmul.f32 %v645_v29, %v2311_v28 }
 0x448   :  { %v648_v39 = vadd.f32 %v647_v33, %v646_v32 }
 0x44a   :  { %649 = vadd.xlane.f32.xlu0 %v648_v39  ;;  %v652_v40 = vmul.f32 %v648_v39, %v648_v39 }
 0x44c   :  { %653 = vadd.xlane.f32.xlu2 %v652_v40 }
 0x45e   :  { %80 = vperm.xlu0 %1772, %v2290_v24  }
 0x466   :  { %1777 = vset.pattern.permute.xlu0 %v1885_v2 }
 0x4bd   :  { %v650_v42 = vpop.xlane.xlu0 %649 }
 0x4be   :  { %v651_v41 = vmul.f32 %v650_v42, %v2161_v38 }
 0x4bf   :  { %v654_v43 = vpop.xlane.xlu2 %653 }
 0x4c0   :  { %v656_v47 = vmul.f32 %v651_v41, %v651_v41  ;;  %v655_v50 = vmul.f32 %v654_v43, %v2161_v38  ;;  %v658_v20 = vsub.f32 %v648_v39, %v651_v41 }
 0x4c2   :  { %v657_v54 = vsub.f32 %v655_v50, %v656_v47 }
 0x4c4   :  { %v659_v56 = vadd.f32 1e-05, %v657_v54 }
 0x4c6   :  { %1817 = vrsqrt.f32 %v659_v56  ;;  %vm666_vm11 = vweird.f32 %v659_v56 }
 0x4cc   :  { %v1818_v61 = vpop.eup %1817 }
 0x4cd   :  { %v661_v63 = vmul.f32 %v1818_v61, %v659_v56  ;;  %vm667_vm10 = vweird.f32 %v1818_v61 }
 0x4ce   :  { %vm668_vm12 = vmor %vm666_vm11, %vm667_vm10 }
 0x4cf   :  { %v662_v8 = vmul.f32 %v1818_v61, %v661_v63  ;;  %v952_v63 = vld [vmem:[%s3114_s7 + $0xf0] sm:$0xff] }
 0x4d0   :  { %v81_v35 = vpop.permute.xlu0 %80  ;;  %960 = vmatpush.msrb.mxu0 %v952_v63 }
 0x4d1   :  { %v663_v10 = vmul.f32 0.5, %v662_v8  ;;  %v112_v46 = vmul.f32 %v1979_v6, %v81_v35  ;;  %v111_v36 = vmul.f32 %v1993_v17, %v81_v35  ;;  %v953_v8 = vld [vmem:[%s3114_s7 + $0xf8] sm:$0xff] }
 0x4d2   :  { %1001 = vmatpush.msrb.mxu1 %v953_v8  ;;  %v945_v35 = vld [vmem:[%s3114_s7 + $0xb8] sm:$0xff] }
 0x4d3   :  { %v664_v18 = vsub.f32 1.5, %v663_v10  ;;  %v183_v49 = vadd.f32 %v167_v48, %v112_v46  ;;  %v182_v5 = vadd.f32 %v166_v60, %v111_v36  ;;  %v950_v10 = vld [vmem:[%s3114_s7 + $0xe0] sm:$0xff]  ;;  %v943_v46 = vld [vmem:[%s3114_s7 + $0xa8] sm:$0xff]  ;;  %v940_v48 = vld [vmem:[%s3114_s7 + $0x90] sm:$0xff] }
 0x4d4   :  { %961 = vmatpush.msrb.mxu0 %v950_v10  ;;  %v935_v36 = vld [vmem:[%s3114_s7 + $0x68] sm:$0xff]  ;;  %v932_v60 = vld [vmem:[%s3114_s7 + $0x50] sm:$0xff] }
 0x4d5   :  { %v665_v24 = vmul.f32 %v1818_v61, %v664_v18  ;;  %v205_v51 = vadd.f32 %v1987_v11, %v183_v49  ;;  %v204_v14 = vadd.f32 %v1997_v22, %v182_v5  ;;  %v951_v18 = vld [vmem:[%s3114_s7 + $0xe8] sm:$0xff]  ;;  %v941_v49 = vld [vmem:[%s3114_s7 + $0x98] sm:$0xff] }
 0x4d6   :  { %1002 = vmatpush.msrb.mxu1 %v951_v18 }
 0x4d7   :  { %v669_v26 = vsel %vm668_vm12, %v1818_v61, %v665_v24  ;;  %v255_v52 = vadd.f32 %v2229_v13, %v205_v51  ;;  %v254_v19 = vadd.f32 %v2235_v37, %v204_v14  ;;  %v948_v24 = vld [vmem:[%s3114_s7 + $0xd0] sm:$0xff]  ;;  %v938_v51 = vld [vmem:[%s3114_s7 + $0x80] sm:$0xff] }
 0x4d8   :  { %v670_v30 = vmul.f32 %v669_v26, %v658_v20  ;;  %v949_v20 = vld [vmem:[%s3114_s7 + $0xd8] sm:$0xff]  ;;  %962 = vmatpush.msrb.mxu0 %v948_v24  ;;  %v946_v26 = vld [vmem:[%s3114_s7 + $0xc0] sm:$0xff]  ;;  %v1887_v24 = vmov 0.0  }
 0x4d9   :  { %1003 = vmatpush.msrb.mxu1 %v949_v20 }
 0x4da   :  { %v676_v34 = vpack.c.bf16 %v670_v30, %v670_v30  ;;  %v671_v32 = vmul.f32 %v2241_v45, %v670_v30  ;;  %v947_v30 = vld [vmem:[%s3114_s7 + $0xc8] sm:$0xff]  ;;  %963 = vmatpush.msrb.mxu0 %v946_v26 }
 0x4db   :  { %1004 = vmatpush.msrb.mxu1 %v947_v30 }
 0x4dc   :  { %685 = vmatmul.bf16.vlgmr.msrb.gmra.mxu2 %v676_v34  ;;  %698 = vmatmul.bf16.vlgmr.msrb.gmra.mxu3 %v676_v34  ;;  %v2328_v41 = vadd.f32 %v2247_v53, %v671_v32  ;;  %v944_v34 = vld [vmem:[%s3114_s7 + $0xb0] sm:$0xff] }
 0x4dd   :  { %964 = vmatpush.msrb.mxu0 %v944_v34  ;;  %1005 = vmatpush.msrb.mxu1 %v945_v35  ;;  %v924_v32 = vld [vmem:[%s3114_s7 + $0x10] sm:$0xff] }
 0x4df   :  { %965 = vmatpush.msrb.mxu0 %v942_v44  ;;  %1006 = vmatpush.msrb.mxu1 %v943_v46 }
 0x4e1   :  { %966 = vmatpush.msrb.mxu0 %v940_v48  ;;  %1007 = vmatpush.msrb.mxu1 %v941_v49 }
 0x4e3   :  { %967 = vmatpush.msrb.mxu0 %v938_v51 }
 0x55f   :  { %v686_v55 = vpop.f32.mrf.mxu2  ;;  %v699_v57 = vpop.f32.mrf.mxu3 }
 0x560   :  { %v704_v58 = vadd.f32 %v699_v57, %v255_v52  ;;  %v703_v23 = vadd.f32 %v686_v55, %v254_v19  ;;  %v939_v52 = vld [vmem:[%s3114_s7 + $0x88] sm:$0xff]  ;;  %v936_v55 = vld [vmem:[%s3114_s7 + $0x70] sm:$0xff]  ;;  %v937_v57 = vld [vmem:[%s3114_s7 + $0x78] sm:$0xff] }
 0x561   :  { %1008 = vmatpush.msrb.mxu1 %v939_v52  ;;  %968 = vmatpush.msrb.mxu0 %v936_v55  ;;  %v931_v19 = vld [vmem:[%s3114_s7 + $0x48] sm:$0xff] }
 0x562   :  { %v1743_v59 = vmul.f32 -1.442695, %v704_v58  ;;  %v934_v58 = vld [vmem:[%s3114_s7 + $0x60] sm:$0xff] }
 0x563   :  { %1009 = vmatpush.msrb.mxu1 %v937_v57  ;;  %969 = vmatpush.msrb.mxu0 %v934_v58 }
 0x564   :  { %1819 = vpow2.f32 %v1743_v59 }
 0x565   :  { %1010 = vmatpush.msrb.mxu1 %v935_v36  ;;  %970 = vmatpush.msrb.mxu0 %v932_v60 }
 0x567   :  { %v688_v1 = vpop.f32.mrf.mxu2  ;;  %v701_v3 = vpop.f32.mrf.mxu3 }
 0x568   :  { %v52_v1 = vld [vmem:[%s3107_s0 + $0x28] sm:$0xff] }
 0x569   :  { %85 = vperm.xlu2 %1776, %v52_v1  }
 0x56a   :  { %v1820_v4 = vpop.eup %1819 }
 0x56b   :  { %v709_v12 = vadd.f32 1.0, %v1820_v4  ;;  %v933_v4 = vld [vmem:[%s3114_s7 + $0x58] sm:$0xff] }
 0x56c   :  { %1011 = vmatpush.msrb.mxu1 %v933_v4 }
 0x56d   :  { %1821 = vrcp.f32 %v709_v12  ;;  %v721_v27 = vand.u32 2147483648, %v709_v12  ;;  %v719_v31 = vand.u32 2147483647, %v709_v12  ;;  %vm715_vm14 = vweird.f32 %v709_v12 }
 0x56e   :  { %1823 = vtanh.f32 %v703_v23  ;;  %v928_v23 = vld [vmem:[%s3114_s7 + $0x30] sm:$0xff]  ;;  %1012 = vmatpush.msrb.mxu1 %v931_v19 }
 0x56f   :  { %v722_v39 = vor.u32 1.1754944e-38, %v721_v27  ;;  %vm720_vm0 = vcmp.eq.f32.partialorder %v719_v31, 8.507059e+37  ;;  %v927_v31 = vld [vmem:[%s3114_s7 + $0x28] sm:$0xff] }
 0x573   :  { %v1822_v15 = vpop.eup %1821 }
 0x574   :  { %v711_v21 = vmul.f32 %v1822_v15, %v709_v12  ;;  %vm716_vm13 = vweird.f32 %v1822_v15  ;;  %v1824_v47 = vpop.eup %1823 }
 0x575   :  { %vm717_vm15 = vmor %vm715_vm14, %vm716_vm13 }
 0x576   :  { %v712_v25 = vsub.f32 1.0, %v711_v21 }
 0x578   :  { %v713_v29 = vmul.f32 %v1822_v15, %v712_v25  ;;  %v929_v25 = vld [vmem:[%s3114_s7 + $0x38] sm:$0xff] }
 0x579   :  { %1013 = vmatpush.msrb.mxu1 %v929_v25 }
 0x57a   :  { %v714_v33 = vadd.f32 %v1822_v15, %v713_v29  ;;  %v926_v29 = vld [vmem:[%s3114_s7 + $0x20] sm:$0xff] }
 0x57b   :  { %1014 = vmatpush.msrb.mxu1 %v927_v31 }
 0x57c   :  { %v718_v40 = vsel %vm717_vm15, %v1822_v15, %v714_v33  ;;  %v930_v15 = vld [vmem:[%s3114_s7 + $0x40] sm:$0xff]  ;;  %v925_v33 = vld [vmem:[%s3114_s7 + $0x18] sm:$0xff] }
 0x57d   :  { %v723_v42 = vsel %vm720_vm0, %v722_v39, %v718_v40  ;;  %971 = vmatpush.msrb.mxu0 %v930_v15  ;;  %v922_v39 = vld [vmem:[%s3114_s7] sm:$0xff]  ;;  %v923_v40 = vld [vmem:[%s3114_s7 + $0x8] sm:$0xff]  ;;  %1015 = vmatpush.msrb.mxu1 %v925_v33 }
 0x57e   :  { %v725_v43 = vsub.f32 1.0, %v723_v42  ;;  %v727_v54 = vmul.f32 %v1824_v47, %v723_v42 }
 0x57f   :  { %972 = vmatpush.msrb.mxu0 %v928_v23  ;;  %1016 = vmatpush.msrb.mxu1 %v923_v40  ;;  %v1120_v40 = vld [vmem:[%s3115_s9 + $0x1f0] sm:$0xff] }
 0x580   :  { %v726_v50 = vmul.f32 %v725_v43, %v2328_v41  ;;  %1169 = vmatpush.msrb.mxu3 %v1120_v40 }
 0x581   :  { %973 = vmatpush.msrb.mxu0 %v926_v29 }
 0x582   :  { %v2331_v56 = vadd.f32 %v727_v54, %v726_v50 }
 0x583   :  { %974 = vmatpush.msrb.mxu0 %v924_v32 }
 0x584   :  { %729 = vadd.xlane.f32.xlu0 %v2331_v56  ;;  %v732_v61 = vmul.f32 %v2331_v56, %v2331_v56 }
 0x585   :  { %975 = vmatpush.msrb.mxu0 %v922_v39  ;;  %v1088_v39 = vld [vmem:[%s3115_s9 + $0xf0] sm:$0xff] }
 0x586   :  { %733 = vadd.xlane.f32.xlu1 %v732_v61  ;;  %1128 = vmatpush.msrb.mxu2 %v1088_v39 }
 0x598   :  { %142 = vperm.xlu0 %1777, %v52_v1  }
 0x5a0   :  { %1780 = vset.pattern.permute.xlu0 %v1884_v0 }
 0x5c3   :  { %v86_v26 = vpop.permute.xlu2 %85 }
 0x5c4   :  { %v114_v30 = vmul.f32 %v1979_v6, %v86_v26 }
 0x5f7   :  { %v730_v59 = vpop.xlane.xlu0 %729 }
 0x5f8   :  { %v731_v3 = vmul.f32 %v730_v59, %v2161_v38 }
 0x5f9   :  { %v734_v5 = vpop.xlane.xlu1 %733 }
 0x5fa   :  { %v736_v12 = vmul.f32 %v731_v3, %v731_v3  ;;  %v735_v14 = vmul.f32 %v734_v5, %v2161_v38  ;;  %v738_v63 = vsub.f32 %v2331_v56, %v731_v3 }
 0x5fc   :  { %v737_v21 = vsub.f32 %v735_v14, %v736_v12 }
 0x5fe   :  { %v739_v27 = vadd.f32 1e-05, %v737_v21 }
 0x600   :  { %1825 = vrsqrt.f32 %v739_v27  ;;  %vm746_vm2 = vweird.f32 %v739_v27 }
 0x606   :  { %v1826_v42 = vpop.eup %1825 }
 0x607   :  { %v741_v43 = vmul.f32 %v1826_v42, %v739_v27  ;;  %vm747_vm1 = vweird.f32 %v1826_v42 }
 0x608   :  { %vm748_vm3 = vmor %vm746_vm2, %vm747_vm1 }
 0x609   :  { %v742_v47 = vmul.f32 %v1826_v42, %v741_v43  ;;  %v1118_v43 = vld [vmem:[%s3115_s9 + $0x1e0] sm:$0xff] }
 0x60a   :  { %1170 = vmatpush.msrb.mxu3 %v1118_v43 }
 0x60b   :  { %v743_v50 = vmul.f32 0.5, %v742_v47  ;;  %v1084_v47 = vld [vmem:[%s3115_s9 + $0xd0] sm:$0xff] }
 0x60d   :  { %v744_v54 = vsub.f32 1.5, %v743_v50  ;;  %v1116_v50 = vld [vmem:[%s3115_s9 + $0x1d0] sm:$0xff] }
 0x60e   :  { %1171 = vmatpush.msrb.mxu3 %v1116_v50 }
 0x60f   :  { %v745_v61 = vmul.f32 %v1826_v42, %v744_v54  ;;  %v1082_v54 = vld [vmem:[%s3115_s9 + $0xc0] sm:$0xff] }
 0x611   :  { %v749_v8 = vsel %vm748_vm3, %v1826_v42, %v745_v61  ;;  %v1086_v42 = vld [vmem:[%s3115_s9 + $0xe0] sm:$0xff]  ;;  %vm1661_vm3 = vcmask 64512  }
 0x612   :  { %v750_v10 = vmul.f32 %v749_v8, %v738_v63  ;;  %1129 = vmatpush.msrb.mxu2 %v1086_v42  ;;  %v1114_v61 = vld [vmem:[%s3115_s9 + $0x1c0] sm:$0xff]  ;;  %v53_v63 = vld [vmem:[%s3107_s0 + $0x30] sm:$0xff] }
 0x613   :  { %1172 = vmatpush.msrb.mxu3 %v1114_v61  ;;  %v1080_v8 = vld [vmem:[%s3115_s9 + $0xb0] sm:$0xff] }
 0x614   :  { %v756_v18 = vpack.c.bf16 %v750_v10, %v750_v10  ;;  %v751_v56 = vmul.f32 %v2241_v45, %v750_v10  ;;  %v113_v45 = vmul.f32 %v1993_v17, %v86_v26  ;;  %1130 = vmatpush.msrb.mxu2 %v1084_v47  ;;  %v1112_v10 = vld [vmem:[%s3115_s9 + $0x1b0] sm:$0xff]  ;;  %v1074_v26 = vld [vmem:[%s3115_s9 + $0x80] sm:$0xff] }
 0x615   :  { %1173 = vmatpush.msrb.mxu3 %v1112_v10 }
 0x616   :  { %765 = vmatmul.bf16.vlgmr.msra.gmra.mxu0 %v756_v18  ;;  %778 = vmatmul.bf16.vlgmr.msra.gmra.mxu1 %v756_v18  ;;  %v752_v20 = vadd.f32 %v2247_v53, %v751_v56  ;;  %v1078_v18 = vld [vmem:[%s3115_s9 + $0xa0] sm:$0xff]  ;;  %v1076_v56 = vld [vmem:[%s3115_s9 + $0x90] sm:$0xff] }
 0x617   :  { %1131 = vmatpush.msrb.mxu2 %v1082_v54 }
 0x619   :  { %1132 = vmatpush.msrb.mxu2 %v1080_v8 }
 0x61b   :  { %1133 = vmatpush.msrb.mxu2 %v1078_v18 }
 0x61d   :  { %1134 = vmatpush.msrb.mxu2 %v1076_v56 }
 0x61f   :  { %1135 = vmatpush.msrb.mxu2 %v1074_v26 }
 0x626   :  { %976 = vmatmul.f32.vlgmr.msrb.gmra.mxu0 %v1887_v24  ;;  %1017 = vmatmul.f32.vlgmr.msrb.gmra.mxu1 %v1887_v24  ;;  %v1110_v24 = vld [vmem:[%s3115_s9 + $0x1a0] sm:$0xff] }
 0x627   :  { %1174 = vmatpush.msrb.mxu3 %v1110_v24 }
 0x62e   :  { %979 = vmatmul.f32.gmra.mxu0 %v2250_v62  ;;  %1020 = vmatmul.f32.gmra.mxu1 %v2250_v62  ;;  %v143_v62 = vpop.permute.xlu0 %142 }
 0x62f   :  { %v168_v49 = vmul.f32 %v1991_v16, %v143_v62 }
 0x631   :  { %v184_v55 = vadd.f32 %v168_v49, %v113_v45  ;;  %v1066_v49 = vld [vmem:[%s3115_s9 + $0x40] sm:$0xff] }
 0x633   :  { %v206_v59 = vadd.f32 %v1997_v22, %v184_v55  ;;  %v1064_v55 = vld [vmem:[%s3115_s9 + $0x30] sm:$0xff] }
 0x635   :  { %v256_v36 = vadd.f32 %v2235_v37, %v206_v59  ;;  %v1062_v59 = vld [vmem:[%s3115_s9 + $0x20] sm:$0xff] }
 0x636   :  { %982 = vmatmul.f32.gmra.mxu0 %v2284_v9  ;;  %1023 = vmatmul.f32.gmra.mxu1 %v2284_v9  ;;  %v169_v9 = vmul.f32 %v1981_v7, %v143_v62  ;;  %v1106_v62 = vld [vmem:[%s3115_s9 + $0x180] sm:$0xff] }
 0x638   :  { %v185_v34 = vadd.f32 %v169_v9, %v114_v30  ;;  %v1072_v30 = vld [vmem:[%s3115_s9 + $0x70] sm:$0xff] }
 0x639   :  { %v1104_v9 = vld [vmem:[%s3115_s9 + $0x170] sm:$0xff]  ;;  %1136 = vmatpush.msrb.mxu2 %v1072_v30 }
 0x63a   :  { %v207_v35 = vadd.f32 %v1987_v11, %v185_v34 }
 0x63e   :  { %985 = vmatmul.f32.gmra.mxu0 %v2311_v28  ;;  %1026 = vmatmul.f32.gmra.mxu1 %v2311_v28  ;;  %v257_v28 = vadd.f32 %v2229_v13, %v207_v35 }
 0x646   :  { %988 = vmatmul.f32.gmra.mxu0 %v2328_v41  ;;  %1029 = vmatmul.f32.gmra.mxu1 %v2328_v41 }
 0x64e   :  { %991 = vmatmul.f32.gmra.mxu0 %v752_v20  ;;  %1032 = vmatmul.f32.gmra.mxu1 %v752_v20 }
 0x693   :  { %v766_v44 = vpop.f32.mrf.mxu0  ;;  %v779_v46 = vpop.f32.mrf.mxu1 }
 0x694   :  { %v784_v41 = vadd.f32 %v779_v46, %v257_v28  ;;  %v783_v60 = vadd.f32 %v766_v44, %v256_v36  ;;  %v1070_v28 = vld [vmem:[%s3115_s9 + $0x60] sm:$0xff]  ;;  %v1068_v44 = vld [vmem:[%s3115_s9 + $0x50] sm:$0xff] }
 0x695   :  { %1137 = vmatpush.msrb.mxu2 %v1070_v28  ;;  %v1094_v36 = vld [vmem:[%s3115_s9 + $0x120] sm:$0xff] }
 0x696   :  { %v1744_v48 = vmul.f32 -1.442695, %v784_v41  ;;  %v1100_v41 = vld [vmem:[%s3115_s9 + $0x150] sm:$0xff] }
 0x697   :  { %1138 = vmatpush.msrb.mxu2 %v1068_v44 }
 0x698   :  { %1827 = vpow2.f32 %v1744_v48 }
 0x699   :  { %1139 = vmatpush.msrb.mxu2 %v1066_v49 }
 0x69b   :  { %v768_v51 = vpop.f32.mrf.mxu0  ;;  %v781_v52 = vpop.f32.mrf.mxu1  ;;  %1140 = vmatpush.msrb.mxu2 %v1064_v55 }
 0x69c   :  { %v1098_v51 = vld [vmem:[%s3115_s9 + $0x140] sm:$0xff] }
 0x69d   :  { %1141 = vmatpush.msrb.mxu2 %v1062_v59 }
 0x69e   :  { %v1828_v57 = vpop.eup %1827 }
 0x69f   :  { %v789_v58 = vadd.f32 1.0, %v1828_v57  ;;  %v1096_v57 = vld [vmem:[%s3115_s9 + $0x130] sm:$0xff] }
 0x6a1   :  { %1829 = vrcp.f32 %v789_v58  ;;  %v801_v5 = vand.u32 2147483648, %v789_v58  ;;  %v799_v14 = vand.u32 2147483647, %v789_v58  ;;  %vm795_vm5 = vweird.f32 %v789_v58 }
 0x6a2   :  { %1831 = vtanh.f32 %v783_v60  ;;  %v1058_v60 = vld [vmem:[%s3115_s9] sm:$0xff] }
 0x6a3   :  { %v802_v19 = vor.u32 1.1754944e-38, %v801_v5  ;;  %vm800_vm7 = vcmp.eq.f32.partialorder %v799_v14, 8.507059e+37 }
 0x6a7   :  { %v1830_v1 = vpop.eup %1829 }
 0x6a8   :  { %v791_v3 = vmul.f32 %v1830_v1, %v789_v58  ;;  %vm796_vm4 = vweird.f32 %v1830_v1  ;;  %v1832_v27 = vpop.eup %1831 }
 0x6a9   :  { %vm797_vm6 = vmor %vm795_vm5, %vm796_vm4 }
 0x6aa   :  { %v792_v4 = vsub.f32 1.0, %v791_v3  ;;  %v1092_v3 = vld [vmem:[%s3115_s9 + $0x110] sm:$0xff] }
 0x6ac   :  { %v793_v12 = vmul.f32 %v1830_v1, %v792_v4 }
 0x6ae   :  { %v794_v15 = vadd.f32 %v1830_v1, %v793_v12 }
 0x6b0   :  { %v798_v21 = vsel %vm797_vm6, %v1830_v1, %v794_v15  ;;  %v1060_v1 = vld [vmem:[%s3115_s9 + $0x10] sm:$0xff] }
 0x6b1   :  { %v803_v23 = vsel %vm800_vm7, %v802_v19, %v798_v21  ;;  %1142 = vmatpush.msrb.mxu2 %v1060_v1 }
 0x6b2   :  { %v805_v25 = vsub.f32 1.0, %v803_v23  ;;  %v807_v31 = vmul.f32 %v1832_v27, %v803_v23  ;;  %v977_v27 = vpop.f32.mrf.mxu0 }
 0x6b3   :  { %1143 = vmatpush.msrb.mxu2 %v1058_v60 }
 0x6b4   :  { %v806_v29 = vmul.f32 %v805_v25, %v752_v20  ;;  %v1108_v20 = vld [vmem:[%s3115_s9 + $0x190] sm:$0xff] }
 0x6b5   :  { %1175 = vmatpush.msrb.mxu3 %v1108_v20 }
 0x6b6   :  { %v2457_v32 = vadd.f32 %v807_v31, %v806_v29  ;;  %v1018_v29 = vpop.f32.mrf.mxu1 }
 0x6b7   :  { %1176 = vmatpush.msrb.mxu3 %v1106_v62 }
 0x6b8   :  { %809 = vadd.xlane.f32.xlu2 %v2457_v32  ;;  %v812_v33 = vmul.f32 %v2457_v32, %v2457_v32 }
 0x6b9   :  { %1177 = vmatpush.msrb.mxu3 %v1104_v9 }
 0x6ba   :  { %813 = vadd.xlane.f32.xlu1 %v812_v33  ;;  %v2569_v33 = vld [vmem:[%s3110_s5] ss:$0 sm:$0xff]  ;;  %v980_v47 = vpop.f32.mrf.mxu0 }
 0x6be   :  { %v1021_v50 = vpop.f32.mrf.mxu1 }
 0x6c2   :  { %v983_v8 = vpop.f32.mrf.mxu0 }
 0x6c6   :  { %v1024_v10 = vpop.f32.mrf.mxu1 }
 0x6ca   :  { %v986_v30 = vpop.f32.mrf.mxu0 }
 0x6ce   :  { %v1027_v9 = vpop.f32.mrf.mxu1 }
 0x6d2   :  { %v989_v44 = vpop.f32.mrf.mxu0 }
 0x6d3   :  { %90 = vperm.xlu1 %1778, %v53_v63  }
 0x6da   :  { %v992_v55 = vpop.f32.mrf.mxu0 }
 0x6db   :  { %1779 = vset.pattern.permute.xlu1 %v1885_v2  ;;  %v1102_v2 = vld [vmem:[%s3115_s9 + $0x160] sm:$0xff] }
 0x6dc   :  { %146 = vperm.xlu1 %1779, %v53_v63   ;;  %1178 = vmatpush.msrb.mxu3 %v1102_v2 }
 0x6de   :  { %1179 = vmatpush.msrb.mxu3 %v1100_v41 }
 0x6e0   :  { %1180 = vmatpush.msrb.mxu3 %v1098_v51 }
 0x6e2   :  { %1181 = vmatpush.msrb.mxu3 %v1096_v57 }
 0x6e4   :  { %1781 = vset.pattern.permute.xlu1 %v1884_v0  ;;  %1182 = vmatpush.msrb.mxu3 %v1094_v36  ;;  %v1090_v0 = vld [vmem:[%s3115_s9 + $0x100] sm:$0xff] }
 0x6e6   :  { %1183 = vmatpush.msrb.mxu3 %v1092_v3 }
 0x6e8   :  { %1184 = vmatpush.msrb.mxu3 %v1090_v0 }
 0x72b   :  { %v810_v34 = vpop.xlane.xlu2 %809 }
 0x72c   :  { %v811_v35 = vmul.f32 %v810_v34, %v2161_v38 }
 0x72d   :  { %v814_v46 = vpop.xlane.xlu1 %813 }
 0x72e   :  { %v816_v48 = vmul.f32 %v811_v35, %v811_v35  ;;  %v815_v45 = vmul.f32 %v814_v46, %v2161_v38  ;;  %v818_v21 = vsub.f32 %v2457_v32, %v811_v35  ;;  %v954_v32 = vld [vmem:[%s3116_s8] sm:$0x3]  ;;  %v1030_v46 = vpop.f32.mrf.mxu1 }
 0x72f   :  { %v2580_v42 = vperm.slane %v954_v32, 0  ;;  %v2582_v43 = vperm.slane %v954_v32, 1 }
 0x730   :  { %v817_v52 = vsub.f32 %v815_v45, %v816_v48 }
 0x731   :  { %v2585_v54 = vadd.f32 %v977_v27, %v2580_v42  ;;  %v2597_v18 = vadd.f32 %v980_v47, %v2580_v42  ;;  %v2600_v24 = vadd.f32 %v1021_v50, %v2582_v43  ;;  %v2609_v26 = vadd.f32 %v983_v8, %v2580_v42 }
 0x732   :  { %v819_v58 = vadd.f32 1e-05, %v817_v52  ;;  %v2612_v62 = vadd.f32 %v1024_v10, %v2582_v43  ;;  %v2621_v28 = vadd.f32 %v986_v30, %v2580_v42  ;;  %v2624_v2 = vadd.f32 %v1027_v9, %v2582_v43 }
 0x733   :  { %v1042_v61 = vmax.f32 %v2585_v54, 0.0  ;;  %v1044_v56 = vmax.f32 %v2597_v18, 0.0  ;;  %v1045_v20 = vmax.f32 %v2600_v24, 0.0  ;;  %v1046_v34 = vmax.f32 %v2609_v26, 0.0  ;;  %v1384_v54 = vld [vmem:[%s3118_s11 + $0x78] sm:$0xff]  ;;  %v1321_v18 = vld [vmem:[%s3117_s12 + $0x68] sm:$0xff] }
 0x734   :  { %1833 = vrsqrt.f32 %v819_v58  ;;  %vm826_vm9 = vweird.f32 %v819_v58  ;;  %v1047_v35 = vmax.f32 %v2612_v62, 0.0  ;;  %v1048_v41 = vmax.f32 %v2621_v28, 0.0  ;;  %v1381_v24 = vld [vmem:[%s3118_s11 + $0x60] sm:$0xff]  ;;  %v1319_v26 = vld [vmem:[%s3117_s12 + $0x58] sm:$0xff]  ;;  %v1379_v62 = vld [vmem:[%s3118_s11 + $0x50] sm:$0xff] }
 0x735   :  { %v1049_v48 = vmax.f32 %v2624_v2, 0.0  ;;  %v2633_v45 = vadd.f32 %v989_v44, %v2580_v42  ;;  %v2636_v49 = vadd.f32 %v1030_v46, %v2582_v43  ;;  %v1317_v28 = vld [vmem:[%s3117_s12 + $0x48] sm:$0xff]  ;;  %v1377_v2 = vld [vmem:[%s3118_s11 + $0x40] sm:$0xff] }
 0x736   :  { %v1033_v57 = vpop.f32.mrf.mxu1 }
 0x737   :  { %v1050_v51 = vmax.f32 %v2633_v45, 0.0  ;;  %v1051_v52 = vmax.f32 %v2636_v49, 0.0  ;;  %v2648_v59 = vadd.f32 %v1033_v57, %v2582_v43  ;;  %v1315_v45 = vld [vmem:[%s3117_s12 + $0x38] sm:$0xff]  ;;  %v1375_v49 = vld [vmem:[%s3118_s11 + $0x30] sm:$0xff] }
 0x739   :  { %v1053_v1 = vmax.f32 %v2648_v59, 0.0  ;;  %v1373_v59 = vld [vmem:[%s3118_s11 + $0x20] sm:$0xff] }
 0x73a   :  { %v1834_v4 = vpop.eup %1833 }
 0x73b   :  { %v821_v5 = vmul.f32 %v1834_v4, %v819_v58  ;;  %vm827_vm8 = vweird.f32 %v1834_v4  ;;  %v2645_v58 = vadd.f32 %v992_v55, %v2580_v42 }
 0x73c   :  { %vm828_vm10 = vmor %vm826_vm9, %vm827_vm8 }
 0x73d   :  { %v822_v12 = vmul.f32 %v1834_v4, %v821_v5  ;;  %v1052_v36 = vmax.f32 %v2645_v58, 0.0  ;;  %v1313_v58 = vld [vmem:[%s3117_s12 + $0x28] sm:$0xff] }
 0x73f   :  { %v823_v14 = vmul.f32 0.5, %v822_v12 }
 0x741   :  { %v824_v15 = vsub.f32 1.5, %v823_v14 }
 0x743   :  { %v825_v19 = vmul.f32 %v1834_v4, %v824_v15 }
 0x745   :  { %v829_v23 = vsel %vm828_vm10, %v1834_v4, %v825_v19  ;;  %v91_v3 = vpop.permute.xlu1 %90 }
 0x746   :  { %v830_v25 = vmul.f32 %v829_v23, %v818_v21  ;;  %v116_v0 = vmul.f32 %v1979_v6, %v91_v3 }
 0x748   :  { %v836_v31 = vpack.c.bf16 %v830_v25, %v830_v25  ;;  %v831_v39 = vmul.f32 %v2569_v33, %v830_v25 }
 0x74a   :  { %845 = vmatmul.bf16.vlgmr.msra.gmra.mxu2 %v836_v31  ;;  %858 = vmatmul.bf16.vlgmr.msra.gmra.mxu3 %v836_v31  ;;  %v2573_v40 = vadd.f32 %v2247_v53, %v831_v39  ;;  %v2588_v53 = vadd.f32 %v1018_v29, %v2582_v43  ;;  %v115_v31 = vmul.f32 %v1993_v17, %v91_v3 }
 0x74b   :  { %1385 = vmatpush.msra.mxu3 %v1384_v54 }
 0x74c   :  { %994 = vmatmul.f32.gmra.mxu0 %v2573_v40  ;;  %1035 = vmatmul.f32.gmra.mxu1 %v2573_v40  ;;  %v1043_v63 = vmax.f32 %v2588_v53, 0.0  ;;  %v1383_v53 = vld [vmem:[%s3118_s11 + $0x70] sm:$0xff] }
 0x74d   :  { %1386 = vmatpush.msra.mxu3 %v1383_v53 }
 0x74e   :  { %v147_v60 = vpop.permute.xlu1 %146 }
 0x74f   :  { %v171_v4 = vmul.f32 %v1981_v7, %v147_v60  ;;  %v170_v39 = vmul.f32 %v1991_v16, %v147_v60 }
 0x751   :  { %v187_v5 = vadd.f32 %v171_v4, %v116_v0  ;;  %v186_v8 = vadd.f32 %v170_v39, %v115_v31  ;;  %v1083_v31 = vld [vmem:[%s3115_s9 + $0xc8] sm:$0xff] }
 0x752   :  { %v1115_v39 = vld [vmem:[%s3115_s9 + $0x1c8] sm:$0xff] }
 0x753   :  { %v209_v12 = vadd.f32 %v1987_v11, %v187_v5  ;;  %v208_v10 = vadd.f32 %v1997_v22, %v186_v8  ;;  %v1111_v8 = vld [vmem:[%s3115_s9 + $0x1a8] sm:$0xff] }
 0x755   :  { %v259_v27 = vadd.f32 %v2229_v13, %v209_v12  ;;  %v258_v9 = vadd.f32 %v2235_v37, %v208_v10  ;;  %v1109_v10 = vld [vmem:[%s3115_s9 + $0x198] sm:$0xff] }
 0x75a   :  { %1144 = vmatmul.f32.vlgmr.msrb.gmra.mxu2 %v1042_v61  ;;  %1185 = vmatmul.f32.vlgmr.msrb.gmra.mxu3 %v1043_v63 }
 0x762   :  { %1147 = vmatmul.f32.gmra.mxu2 %v1044_v56  ;;  %1188 = vmatmul.f32.gmra.mxu3 %v1045_v20 }
 0x76a   :  { %1150 = vmatmul.f32.gmra.mxu2 %v1046_v34  ;;  %1191 = vmatmul.f32.gmra.mxu3 %v1047_v35 }
 0x772   :  { %1153 = vmatmul.f32.gmra.mxu2 %v1048_v41  ;;  %1194 = vmatmul.f32.gmra.mxu3 %v1049_v48 }
 0x77a   :  { %1156 = vmatmul.f32.gmra.mxu2 %v1050_v51  ;;  %1197 = vmatmul.f32.gmra.mxu3 %v1051_v52 }
 0x782   :  { %1159 = vmatmul.f32.gmra.mxu2 %v1052_v36  ;;  %1200 = vmatmul.f32.gmra.mxu3 %v1053_v1 }
 0x7c9   :  { %v995_v14 = vpop.f32.mrf.mxu0  ;;  %v1036_v15 = vpop.f32.mrf.mxu1 }
 0x7ca   :  { %v2660_v19 = vadd.f32 %v995_v14, %v2580_v42  ;;  %v2663_v21 = vadd.f32 %v1036_v15, %v2582_v43 }
 0x7cc   :  { %v1054_v23 = vmax.f32 %v2660_v19, 0.0  ;;  %v1055_v25 = vmax.f32 %v2663_v21, 0.0  ;;  %v1311_v19 = vld [vmem:[%s3117_s12 + $0x18] sm:$0xff]  ;;  %v1371_v21 = vld [vmem:[%s3118_s11 + $0x10] sm:$0xff] }
 0x7cd   :  { %v846_v6 = vpop.f32.mrf.mxu2  ;;  %v859_v29 = vpop.f32.mrf.mxu3 }
 0x7ce   :  { %v864_v7 = vadd.f32 %v859_v29, %v259_v27  ;;  %1162 = vmatmul.f32.gmra.mxu2 %v1054_v23  ;;  %1203 = vmatmul.f32.gmra.mxu3 %v1055_v25  ;;  %v863_v46 = vadd.f32 %v846_v6, %v258_v9  ;;  %v1089_v27 = vld [vmem:[%s3115_s9 + $0xf8] sm:$0xff]  ;;  %v1119_v29 = vld [vmem:[%s3115_s9 + $0x1e8] sm:$0xff] }
 0x7cf   :  { %v1121_v6 = vld [vmem:[%s3115_s9 + $0x1f8] sm:$0xff]  ;;  %1210 = vmatpush.msra.mxu0 %v1089_v27  ;;  %v1107_v9 = vld [vmem:[%s3115_s9 + $0x188] sm:$0xff] }
 0x7d0   :  { %v1745_v11 = vmul.f32 -1.442695, %v864_v7  ;;  %1251 = vmatpush.msra.mxu1 %v1121_v6  ;;  %v1085_v7 = vld [vmem:[%s3115_s9 + $0xd8] sm:$0xff] }
 0x7d2   :  { %1835 = vpow2.f32 %v1745_v11  ;;  %1252 = vmatpush.msra.mxu1 %v1119_v29  ;;  %v1117_v11 = vld [vmem:[%s3115_s9 + $0x1d8] sm:$0xff] }
 0x7d3   :  { %v1093_v29 = vld [vmem:[%s3115_s9 + $0x118] sm:$0xff] }
 0x7d4   :  { %1253 = vmatpush.msra.mxu1 %v1117_v11  ;;  %v1059_v11 = vld [vmem:[%s3115_s9 + $0x8] sm:$0xff] }
 0x7d5   :  { %v848_v32 = vpop.f32.mrf.mxu2  ;;  %v861_v47 = vpop.f32.mrf.mxu3 }
 0x7d6   :  { %1254 = vmatpush.msra.mxu1 %v1115_v39  ;;  %v1081_v32 = vld [vmem:[%s3115_s9 + $0xb8] sm:$0xff] }
 0x7d7   :  { %v1113_v47 = vld [vmem:[%s3115_s9 + $0x1b8] sm:$0xff] }
 0x7d8   :  { %v1836_v50 = vpop.eup %1835  ;;  %1255 = vmatpush.msra.mxu1 %v1113_v47 }
 0x7d9   :  { %v869_v13 = vadd.f32 1.0, %v1836_v50  ;;  %v1079_v50 = vld [vmem:[%s3115_s9 + $0xa8] sm:$0xff] }
 0x7da   :  { %1256 = vmatpush.msra.mxu1 %v1111_v8 }
 0x7db   :  { %1837 = vrcp.f32 %v869_v13  ;;  %v881_v57 = vand.u32 2147483648, %v869_v13  ;;  %v879_v17 = vand.u32 2147483647, %v869_v13  ;;  %vm875_vm12 = vweird.f32 %v869_v13 }
 0x7dc   :  { %1839 = vtanh.f32 %v863_v46  ;;  %1257 = vmatpush.msra.mxu1 %v1109_v10  ;;  %v1105_v46 = vld [vmem:[%s3115_s9 + $0x178] sm:$0xff] }
 0x7dd   :  { %v882_v3 = vor.u32 1.1754944e-38, %v881_v57  ;;  %vm880_vm14 = vcmp.eq.f32.partialorder %v879_v17, 8.507059e+37  ;;  %v1103_v57 = vld [vmem:[%s3115_s9 + $0x168] sm:$0xff]  ;;  %v1101_v17 = vld [vmem:[%s3115_s9 + $0x158] sm:$0xff] }
 0x7de   :  { %1258 = vmatpush.msra.mxu1 %v1107_v9 }
 0x7e0   :  { %1259 = vmatpush.msra.mxu1 %v1105_v46  ;;  %v1876_v46 = vld [vmem:[%s3111_s6] ss:$0 sm:$0xff] }
 0x7e1   :  { %v1838_v30 = vpop.eup %1837 }
 0x7e2   :  { %v871_v44 = vmul.f32 %v1838_v30, %v869_v13  ;;  %vm876_vm11 = vweird.f32 %v1838_v30  ;;  %v1840_v22 = vpop.eup %1839  ;;  %v1077_v13 = vld [vmem:[%s3115_s9 + $0x98] sm:$0xff]  ;;  %1260 = vmatpush.msra.mxu1 %v1103_v57  ;;  %v1369_v57 = vld [vmem:[%s3118_s11] sm:$0xff] }
 0x7e3   :  { %vm877_vm13 = vmor %vm875_vm12, %vm876_vm11 }
 0x7e4   :  { %v872_v55 = vsub.f32 1.0, %v871_v44  ;;  %v1073_v44 = vld [vmem:[%s3115_s9 + $0x78] sm:$0xff]  ;;  %1261 = vmatpush.msra.mxu1 %v1101_v17  ;;  %v1145_v17 = vpop.f32.mrf.mxu2 }
 0x7e6   :  { %v873_v0 = vmul.f32 %v1838_v30, %v872_v55  ;;  %v1071_v55 = vld [vmem:[%s3115_s9 + $0x68] sm:$0xff] }
 0x7e8   :  { %v874_v16 = vadd.f32 %v1838_v30, %v873_v0  ;;  %v1069_v0 = vld [vmem:[%s3115_s9 + $0x58] sm:$0xff] }
 0x7ea   :  { %v878_v60 = vsel %vm877_vm13, %v1838_v30, %v874_v16  ;;  %v1075_v30 = vld [vmem:[%s3115_s9 + $0x88] sm:$0xff] }
 0x7eb   :  { %v883_v4 = vsel %vm880_vm14, %v882_v3, %v878_v60  ;;  %v1067_v16 = vld [vmem:[%s3115_s9 + $0x48] sm:$0xff] }
 0x7ec   :  { %v885_v5 = vsub.f32 1.0, %v883_v4  ;;  %v887_v37 = vmul.f32 %v1840_v22, %v883_v4  ;;  %v1099_v3 = vld [vmem:[%s3115_s9 + $0x148] sm:$0xff]  ;;  %v1097_v22 = vld [vmem:[%s3115_s9 + $0x138] sm:$0xff] }
 0x7ed   :  { %1262 = vmatpush.msra.mxu1 %v1099_v3  ;;  %v1122_v3 = vld [vmem:[%s3119_s10] sm:$0x3] }
 0x7ee   :  { %v886_v12 = vmul.f32 %v885_v5, %v2573_v40  ;;  %v1087_v40 = vld [vmem:[%s3115_s9 + $0xe8] sm:$0xff]  ;;  %v1065_v5 = vld [vmem:[%s3115_s9 + $0x38] sm:$0xff] }
 0x7ef   :  { %1211 = vmatpush.msra.mxu0 %v1087_v40  ;;  %1263 = vmatpush.msra.mxu1 %v1097_v22  ;;  %v1061_v40 = vld [vmem:[%s3115_s9 + $0x18] sm:$0xff] }
 0x7f0   :  { %v2677_v14 = vadd.f32 %v887_v37, %v886_v12  ;;  %v1063_v12 = vld [vmem:[%s3115_s9 + $0x28] sm:$0xff] }
 0x7f1   :  { %1212 = vmatpush.msra.mxu0 %v1085_v7 }
 0x7f2   :  { %889 = vadd.xlane.f32.xlu0 %v2677_v14  ;;  %v892_v15 = vmul.f32 %v2677_v14, %v2677_v14 }
 0x7f3   :  { %1213 = vmatpush.msra.mxu0 %v1083_v31  ;;  %v1091_v31 = vld [vmem:[%s3115_s9 + $0x108] sm:$0xff] }
 0x7f4   :  { %893 = vadd.xlane.f32.xlu2 %v892_v15  ;;  %v1095_v15 = vld [vmem:[%s3115_s9 + $0x128] sm:$0xff] }
 0x7f5   :  { %1214 = vmatpush.msra.mxu0 %v1081_v32  ;;  %1264 = vmatpush.msra.mxu1 %v1095_v15 }
 0x7f7   :  { %1215 = vmatpush.msra.mxu0 %v1079_v50  ;;  %1265 = vmatpush.msra.mxu1 %v1093_v29 }
 0x7f9   :  { %1216 = vmatpush.msra.mxu0 %v1077_v13  ;;  %1266 = vmatpush.msra.mxu1 %v1091_v31 }
 0x7fb   :  { %1217 = vmatpush.msra.mxu0 %v1075_v30 }
 0x7fd   :  { %1218 = vmatpush.msra.mxu0 %v1073_v44 }
 0x7ff   :  { %1219 = vmatpush.msra.mxu0 %v1071_v55 }
 0x801   :  { %1220 = vmatpush.msra.mxu0 %v1069_v0  ;;  %v1308_v0 = vld [vmem:[%s3117_s12] sm:$0xff] }
 0x803   :  { %1221 = vmatpush.msra.mxu0 %v1067_v16  ;;  %v1186_v16 = vpop.f32.mrf.mxu3 }
 0x805   :  { %1222 = vmatpush.msra.mxu0 %v1065_v5 }
 0x807   :  { %1223 = vmatpush.msra.mxu0 %v1063_v12 }
 0x809   :  { %1224 = vmatpush.msra.mxu0 %v1061_v40 }
 0x80b   :  { %1225 = vmatpush.msra.mxu0 %v1059_v11  ;;  %v1189_v29 = vpop.f32.mrf.mxu3 }
 0x865   :  { %v890_v60 = vpop.xlane.xlu0 %889 }
 0x866   :  { %v891_v4 = vmul.f32 %v890_v60, %v2161_v38  ;;  %v2912_v60 = vperm.slane %v1122_v3, 0 }
 0x867   :  { %v894_v37 = vpop.xlane.xlu2 %893 }
 0x868   :  { %v896_v27 = vmul.f32 %v891_v4, %v891_v4  ;;  %v895_v6 = vmul.f32 %v894_v37, %v2161_v38  ;;  %v898_v10 = vsub.f32 %v2677_v14, %v891_v4  ;;  %v1309_v14 = vld [vmem:[%s3117_s12 + $0x8] sm:$0xff]  ;;  %v1148_v4 = vpop.f32.mrf.mxu2  ;;  %v1146_v12 = vadd.f32 %v1145_v17, %v2912_v60 }
 0x86a   :  { %v897_v7 = vsub.f32 %v895_v6, %v896_v27  ;;  %v1187_v40 = vadd.f32 %v1186_v16, %v1146_v12 }
 0x86c   :  { %v899_v38 = vadd.f32 1e-05, %v897_v7  ;;  %v2917_v7 = vperm.slane %v1122_v3, 1 }
 0x86e   :  { %1841 = vrsqrt.f32 %v899_v38  ;;  %vm906_vm0 = vweird.f32 %v899_v38 }
 0x874   :  { %v1842_v39 = vpop.eup %1841 }
 0x875   :  { %v901_v32 = vmul.f32 %v1842_v39, %v899_v38  ;;  %vm907_vm15 = vweird.f32 %v1842_v39  ;;  %v1292_v38 = vmax.f32 %v1187_v40, 0.0 }
 0x876   :  { %vm908_vm1 = vmor %vm906_vm0, %vm907_vm15 }
 0x877   :  { %v902_v47 = vmul.f32 %v1842_v39, %v901_v32 }
 0x879   :  { %v903_v50 = vmul.f32 0.5, %v902_v47 }
 0x87b   :  { %v904_v8 = vsub.f32 1.5, %v903_v50 }
 0x87d   :  { %v905_v13 = vmul.f32 %v1842_v39, %v904_v8  ;;  %v1192_v8 = vpop.f32.mrf.mxu3 }
 0x87f   :  { %v909_v30 = vsel %vm908_vm1, %v1842_v39, %v905_v13  ;;  %v1151_v39 = vpop.f32.mrf.mxu2 }
 0x880   :  { %v910_v9 = vmul.f32 %v909_v30, %v898_v10 }
 0x882   :  { %v911_v44 = vmul.f32 %v2569_v33, %v910_v9  ;;  %v1323_v33 = vld [vmem:[%s3117_s12 + $0x78] sm:$0xff] }
 0x883   :  { %1328 = vmatpush.msra.mxu2 %v1323_v33 }
 0x884   :  { %v912_v55 = vadd.f32 %v1876_v46, %v911_v44  ;;  %v1152_v44 = vadd.f32 %v1151_v39, %v2912_v60 }
 0x886   :  { %997 = vmatmul.f32.gmra.mxu0 %v912_v55  ;;  %1038 = vmatmul.f32.gmra.mxu1 %v912_v55  ;;  %v1193_v54 = vadd.f32 %v1192_v8, %v1152_v44 }
 0x887   :  { %v1154_v46 = vpop.f32.mrf.mxu2 }
 0x88e   :  { %1226 = vmatmul.f32.vlgmr.msra.gmra.mxu0 %v1042_v61  ;;  %1267 = vmatmul.f32.vlgmr.msra.gmra.mxu1 %v1043_v63  ;;  %v1322_v61 = vld [vmem:[%s3117_s12 + $0x70] sm:$0xff]  ;;  %v1382_v63 = vld [vmem:[%s3118_s11 + $0x68] sm:$0xff] }
 0x88f   :  { %1329 = vmatpush.msra.mxu2 %v1322_v61  ;;  %1387 = vmatpush.msra.mxu3 %v1382_v63 }
 0x891   :  { %1330 = vmatpush.msra.mxu2 %v1321_v18  ;;  %1388 = vmatpush.msra.mxu3 %v1381_v24  ;;  %v1195_v18 = vpop.f32.mrf.mxu3  ;;  %v1296_v24 = vmax.f32 %v1193_v54, 0.0 }
 0x896   :  { %1229 = vmatmul.f32.gmra.mxu0 %v1044_v56  ;;  %1270 = vmatmul.f32.gmra.mxu1 %v1045_v20  ;;  %v1320_v56 = vld [vmem:[%s3117_s12 + $0x60] sm:$0xff]  ;;  %v1380_v20 = vld [vmem:[%s3118_s11 + $0x58] sm:$0xff] }
 0x897   :  { %1331 = vmatpush.msra.mxu2 %v1320_v56  ;;  %1389 = vmatpush.msra.mxu3 %v1380_v20  ;;  %v1155_v56 = vadd.f32 %v1154_v46, %v2912_v60 }
 0x899   :  { %1332 = vmatpush.msra.mxu2 %v1319_v26  ;;  %1390 = vmatpush.msra.mxu3 %v1379_v62  ;;  %v1157_v26 = vpop.f32.mrf.mxu2 }
 0x89e   :  { %1232 = vmatmul.f32.gmra.mxu0 %v1046_v34  ;;  %1273 = vmatmul.f32.gmra.mxu1 %v1047_v35  ;;  %v1318_v34 = vld [vmem:[%s3117_s12 + $0x50] sm:$0xff]  ;;  %v1378_v35 = vld [vmem:[%s3118_s11 + $0x48] sm:$0xff] }
 0x89f   :  { %1333 = vmatpush.msra.mxu2 %v1318_v34  ;;  %1391 = vmatpush.msra.mxu3 %v1378_v35  ;;  %v1196_v34 = vadd.f32 %v1195_v18, %v1155_v56 }
 0x8a1   :  { %1334 = vmatpush.msra.mxu2 %v1317_v28  ;;  %1392 = vmatpush.msra.mxu3 %v1377_v2 }
 0x8a6   :  { %1235 = vmatmul.f32.gmra.mxu0 %v1048_v41  ;;  %1276 = vmatmul.f32.gmra.mxu1 %v1049_v48  ;;  %v1316_v41 = vld [vmem:[%s3117_s12 + $0x40] sm:$0xff]  ;;  %v1376_v48 = vld [vmem:[%s3118_s11 + $0x38] sm:$0xff] }
 0x8a7   :  { %1335 = vmatpush.msra.mxu2 %v1316_v41  ;;  %1393 = vmatpush.msra.mxu3 %v1376_v48  ;;  %v1298_v41 = vmax.f32 %v1196_v34, 0.0  ;;  %v1158_v48 = vadd.f32 %v1157_v26, %v2912_v60 }
 0x8a9   :  { %1336 = vmatpush.msra.mxu2 %v1315_v45  ;;  %1394 = vmatpush.msra.mxu3 %v1375_v49  ;;  %v1198_v49 = vpop.f32.mrf.mxu3 }
 0x8ae   :  { %1238 = vmatmul.f32.gmra.mxu0 %v1050_v51  ;;  %1279 = vmatmul.f32.gmra.mxu1 %v1051_v52  ;;  %v1314_v51 = vld [vmem:[%s3117_s12 + $0x30] sm:$0xff]  ;;  %v1374_v52 = vld [vmem:[%s3118_s11 + $0x28] sm:$0xff] }
 0x8af   :  { %1337 = vmatpush.msra.mxu2 %v1314_v51  ;;  %1395 = vmatpush.msra.mxu3 %v1374_v52  ;;  %v1199_v52 = vadd.f32 %v1198_v49, %v1158_v48 }
 0x8b1   :  { %1338 = vmatpush.msra.mxu2 %v1313_v58  ;;  %1396 = vmatpush.msra.mxu3 %v1373_v59  ;;  %v1160_v58 = vpop.f32.mrf.mxu2 }
 0x8b6   :  { %1241 = vmatmul.f32.gmra.mxu0 %v1052_v36  ;;  %1282 = vmatmul.f32.gmra.mxu1 %v1053_v1  ;;  %v1312_v36 = vld [vmem:[%s3117_s12 + $0x20] sm:$0xff]  ;;  %v1372_v1 = vld [vmem:[%s3118_s11 + $0x18] sm:$0xff] }
 0x8b7   :  { %1339 = vmatpush.msra.mxu2 %v1312_v36  ;;  %1397 = vmatpush.msra.mxu3 %v1372_v1 }
 0x8b9   :  { %1340 = vmatpush.msra.mxu2 %v1311_v19  ;;  %1398 = vmatpush.msra.mxu3 %v1371_v21  ;;  %v1300_v19 = vmax.f32 %v1199_v52, 0.0  ;;  %v1161_v21 = vadd.f32 %v1160_v58, %v2912_v60 }
 0x8be   :  { %1244 = vmatmul.f32.gmra.mxu0 %v1054_v23  ;;  %1285 = vmatmul.f32.gmra.mxu1 %v1055_v25  ;;  %v1310_v23 = vld [vmem:[%s3117_s12 + $0x10] sm:$0xff]  ;;  %v1370_v25 = vld [vmem:[%s3118_s11 + $0x8] sm:$0xff]  ;;  %s1888_s12 = smov 1  }
 0x8bf   :  { %1341 = vmatpush.msra.mxu2 %v1310_v23  ;;  %1399 = vmatpush.msra.mxu3 %v1370_v25 }
 0x8c1   :  { %1342 = vmatpush.msra.mxu2 %v1309_v14  ;;  %1400 = vmatpush.msra.mxu3 %v1369_v57  ;;  %v1201_v14 = vpop.f32.mrf.mxu3 }
 0x8c2   :  { %v1202_v57 = vadd.f32 %v1201_v14, %v1161_v21 }
 0x8c3   :  { %1343 = vmatpush.msra.mxu2 %v1308_v0  ;;  %v1163_v0 = vpop.f32.mrf.mxu2 }
 0x903   :  { %v998_v5 = vpop.f32.mrf.mxu0  ;;  %v1039_v22 = vpop.f32.mrf.mxu1 }
 0x904   :  { %v999_v37 = vadd.f32 %v998_v5, %v2580_v42  ;;  %v1040_v15 = vadd.f32 %v1039_v22, %v2582_v43  ;;  %v1149_v42 = vadd.f32 %v1148_v4, %v2912_v60  ;;  %v1302_v4 = vmax.f32 %v1202_v57, 0.0 }
 0x905   :  { %v1164_v5 = vadd.f32 %v1163_v0, %v2912_v60 }
 0x906   :  { %v1056_v27 = vmax.f32 %v999_v37, 0.0  ;;  %v1057_v6 = vmax.f32 %v1040_v15, 0.0  ;;  %v1190_v50 = vadd.f32 %v1189_v29, %v1149_v42  ;;  %v1204_v37 = vpop.f32.mrf.mxu3 }
 0x907   :  { %v1205_v15 = vadd.f32 %v1204_v37, %v1164_v5 }
 0x908   :  { %1165 = vmatmul.f32.gmra.mxu2 %v1056_v27  ;;  %1206 = vmatmul.f32.gmra.mxu3 %v1057_v6  ;;  %v1294_v9 = vmax.f32 %v1190_v50, 0.0 }
 0x909   :  { %1247 = vmatmul.f32.gmra.mxu0 %v1056_v27  ;;  %1288 = vmatmul.f32.gmra.mxu1 %v1057_v6  ;;  %v1304_v29 = vmax.f32 %v1205_v15, 0.0 }
 0x90b   :  { %v1227_v11 = vpop.f32.mrf.mxu0  ;;  %v1268_v31 = vpop.f32.mrf.mxu1 }
 0x90c   :  { %v1228_v32 = vadd.f32 %v1227_v11, %v2917_v7 }
 0x90e   :  { %v1269_v47 = vadd.f32 %v1268_v31, %v1228_v32 }
 0x910   :  { %v1293_v43 = vmax.f32 %v1269_v47, 0.0  ;;  %1401 = vmatmul.f32.vlgmr.msra.gmra.mxu3 %v1292_v38 }
 0x912   :  { %1344 = vmatmul.f32.vlgmr.msra.gmra.mxu2 %v1293_v43 }
 0x913   :  { %v1230_v13 = vpop.f32.mrf.mxu0  ;;  %v1271_v10 = vpop.f32.mrf.mxu1 }
 0x914   :  { %v1231_v30 = vadd.f32 %v1230_v13, %v2917_v7 }
 0x916   :  { %v1272_v55 = vadd.f32 %v1271_v10, %v1231_v30  ;;  %v2937_v30 = vld [vmem:[%s3120_s13] ss:$0 sm:$0xff] }
 0x918   :  { %v1295_v33 = vmax.f32 %v1272_v55, 0.0  ;;  %1404 = vmatmul.f32.gmra.mxu3 %v1294_v9 }
 0x91a   :  { %1347 = vmatmul.f32.gmra.mxu2 %v1295_v33 }
 0x91b   :  { %v1233_v53 = vpop.f32.mrf.mxu0  ;;  %v1274_v61 = vpop.f32.mrf.mxu1 }
 0x91c   :  { %v1234_v63 = vadd.f32 %v1233_v53, %v2917_v7 }
 0x91e   :  { %v1275_v20 = vadd.f32 %v1274_v61, %v1234_v63 }
 0x920   :  { %v1297_v62 = vmax.f32 %v1275_v20, 0.0  ;;  %1407 = vmatmul.f32.gmra.mxu3 %v1296_v24 }
 0x922   :  { %1350 = vmatmul.f32.gmra.mxu2 %v1297_v62 }
 0x923   :  { %v1236_v35 = vpop.f32.mrf.mxu0  ;;  %v1277_v28 = vpop.f32.mrf.mxu1 }
 0x924   :  { %v1237_v2 = vadd.f32 %v1236_v35, %v2917_v7 }
 0x926   :  { %v1278_v45 = vadd.f32 %v1277_v28, %v1237_v2 }
 0x928   :  { %v1299_v51 = vmax.f32 %v1278_v45, 0.0  ;;  %1410 = vmatmul.f32.gmra.mxu3 %v1298_v41 }
 0x92a   :  { %1353 = vmatmul.f32.gmra.mxu2 %v1299_v51 }
 0x92b   :  { %v1239_v59 = vpop.f32.mrf.mxu0  ;;  %v1280_v36 = vpop.f32.mrf.mxu1 }
 0x92c   :  { %v1240_v1 = vadd.f32 %v1239_v59, %v2917_v7 }
 0x92e   :  { %v1281_v23 = vadd.f32 %v1280_v36, %v1240_v1 }
 0x930   :  { %v1301_v25 = vmax.f32 %v1281_v23, 0.0  ;;  %1413 = vmatmul.f32.gmra.mxu3 %v1300_v19 }
 0x932   :  { %1356 = vmatmul.f32.gmra.mxu2 %v1301_v25 }
 0x933   :  { %v1242_v17 = vpop.f32.mrf.mxu0  ;;  %v1283_v16 = vpop.f32.mrf.mxu1 }
 0x934   :  { %v1243_v3 = vadd.f32 %v1242_v17, %v2917_v7 }
 0x936   :  { %v1284_v22 = vadd.f32 %v1283_v16, %v1243_v3 }
 0x938   :  { %v1303_v12 = vmax.f32 %v1284_v22, 0.0  ;;  %1416 = vmatmul.f32.gmra.mxu3 %v1302_v4 }
 0x93a   :  { %1359 = vmatmul.f32.gmra.mxu2 %v1303_v12 }
 0x93b   :  { %v1245_v27 = vpop.f32.mrf.mxu0  ;;  %v1286_v40 = vpop.f32.mrf.mxu1 }
 0x93c   :  { %v1246_v6 = vadd.f32 %v1245_v27, %v2917_v7 }
 0x93e   :  { %v1287_v11 = vadd.f32 %v1286_v40, %v1246_v6 }
 0x940   :  { %v1305_v31 = vmax.f32 %v1287_v11, 0.0  ;;  %1419 = vmatmul.f32.gmra.mxu3 %v1304_v29 }
 0x942   :  { %1362 = vmatmul.f32.gmra.mxu2 %v1305_v31 }
 0x986   :  { %v1248_v38 = vpop.f32.mrf.mxu0  ;;  %v1289_v32 = vpop.f32.mrf.mxu1 }
 0x987   :  { %v1249_v39 = vadd.f32 %v1248_v38, %v2917_v7 }
 0x989   :  { %v1290_v42 = vadd.f32 %v1289_v32, %v1249_v39 }
 0x98b   :  { %v1307_v47 = vmax.f32 %v1290_v42, 0.0  ;;  %v1166_v43 = vpop.f32.mrf.mxu2  ;;  %v1207_v50 = vpop.f32.mrf.mxu3 }
 0x98c   :  { %v1167_v8 = vadd.f32 %v1166_v43, %v2912_v60 }
 0x98d   :  { %1365 = vmatmul.f32.gmra.mxu2 %v1307_v47 }
 0x98e   :  { %v1208_v13 = vadd.f32 %v1207_v50, %v1167_v8 }
 0x990   :  { %v1306_v10 = vmax.f32 %v1208_v13, 0.0 }
 0x992   :  { %1422 = vmatmul.f32.gmra.mxu3 %v1306_v10 }
 0x993   :  { %v1402_v9 = vpop.f32.mrf.mxu3 }
 0x995   :  { %v1345_v44 = vpop.f32.mrf.mxu2 }
 0x996   :  { %v1346_v7 = vadd.f32 %v2937_v30, %v1345_v44 }
 0x998   :  { %v2940_v46 = vadd.f32 %v1402_v9, %v1346_v7 }
 0x99a   :  { %v1442_v55 = vand.u32 2147483647, %v2940_v46  ;;  %v1434_v52 = vmax.f32 %v2940_v46, 0.0 }
 0x99b   :  { %v1405_v33 = vpop.f32.mrf.mxu3 }
 0x99c   :  { %v1450_v54 = vsub.f32 0.0, %v1442_v55 }
 0x99d   :  { %v1348_v60 = vpop.f32.mrf.mxu2 }
 0x99e   :  { %v1349_v53 = vadd.f32 %v2937_v30, %v1348_v60  ;;  %v1458_v61 = vmul.f32 1.442695, %v1450_v54 }
 0x9a0   :  { %v2944_v63 = vadd.f32 %v1405_v33, %v1349_v53  ;;  %1843 = vpow2.f32 %v1458_v61 }
 0x9a2   :  { %v1443_v18 = vand.u32 2147483647, %v2944_v63  ;;  %v1435_v22 = vmax.f32 %v2944_v63, 0.0 }
 0x9a3   :  { %v1408_v24 = vpop.f32.mrf.mxu3 }
 0x9a4   :  { %v1451_v56 = vsub.f32 0.0, %v1443_v18 }
 0x9a5   :  { %v1351_v20 = vpop.f32.mrf.mxu2 }
 0x9a6   :  { %v1844_v26 = vpop.eup %1843  ;;  %v1352_v62 = vadd.f32 %v2937_v30, %v1351_v20  ;;  %v1460_v34 = vmul.f32 1.442695, %v1451_v56 }
 0x9a7   :  { %v1474_v35 = vadd.f32 1.0, %v1844_v26 }
 0x9a8   :  { %v2948_v28 = vadd.f32 %v1408_v24, %v1352_v62  ;;  %1845 = vpow2.f32 %v1460_v34 }
 0x9a9   :  { %1847 = vlog2.f32 %v1474_v35 }
 0x9aa   :  { %v1444_v2 = vand.u32 2147483647, %v2948_v28  ;;  %v1436_v42 = vmax.f32 %v2948_v28, 0.0 }
 0x9ab   :  { %v1411_v41 = vpop.f32.mrf.mxu3 }
 0x9ac   :  { %v1452_v48 = vsub.f32 0.0, %v1444_v2 }
 0x9ad   :  { %v1354_v45 = vpop.f32.mrf.mxu2 }
 0x9ae   :  { %v1846_v49 = vpop.eup %1845  ;;  %v1355_v51 = vadd.f32 %v2937_v30, %v1354_v45  ;;  %v1462_v58 = vmul.f32 1.442695, %v1452_v48 }
 0x9af   :  { %v1848_v59 = vpop.eup %1847  ;;  %v1475_v36 = vadd.f32 1.0, %v1846_v49 }
 0x9b0   :  { %v2953_v1 = vadd.f32 %v1411_v41, %v1355_v51  ;;  %v1483_v19 = vmul.f32 0.6931472, %v1848_v59  ;;  %1849 = vpow2.f32 %v1462_v58 }
 0x9b1   :  { %1851 = vlog2.f32 %v1475_v36 }
 0x9b2   :  { %v1445_v21 = vand.u32 2147483647, %v2953_v1  ;;  %v2956_v23 = vadd.f32 %v1483_v19, %v1434_v52  ;;  %v1437_v60 = vmax.f32 %v2953_v1, 0.0 }
 0x9b3   :  { %v1414_v25 = vpop.f32.mrf.mxu3 }
 0x9b4   :  { %1530 = vrot.lane.b32.xlu1 %v2956_v23, %s1888_s12  ;;  %v1453_v14 = vsub.f32 0.0, %v1445_v21 }
 0x9b5   :  { %v1357_v57 = vpop.f32.mrf.mxu2 }
 0x9b6   :  { %v1850_v0 = vpop.eup %1849  ;;  %v1358_v17 = vadd.f32 %v2937_v30, %v1357_v57  ;;  %v1464_v16 = vmul.f32 1.442695, %v1453_v14 }
 0x9b7   :  { %v1852_v3 = vpop.eup %1851  ;;  %v1476_v4 = vadd.f32 1.0, %v1850_v0 }
 0x9b8   :  { %v2961_v5 = vadd.f32 %v1414_v25, %v1358_v17  ;;  %v1485_v12 = vmul.f32 0.6931472, %v1852_v3  ;;  %1853 = vpow2.f32 %v1464_v16  ;;  %v1877_v17 = vld [vmem:[%s3107_s0 + $0x8] sm:$0xff] }
 0x9b9   :  { %1855 = vlog2.f32 %v1476_v4 }
 0x9ba   :  { %v1446_v37 = vand.u32 2147483647, %v2961_v5  ;;  %v2965_v15 = vadd.f32 %v1485_v12, %v1435_v22  ;;  %v1438_v34 = vmax.f32 %v2961_v5, 0.0 }
 0x9bb   :  { %v1417_v6 = vpop.f32.mrf.mxu3 }
 0x9bc   :  { %1532 = vrot.lane.b32.xlu2 %v2965_v15, %s1888_s12  ;;  %v1454_v27 = vsub.f32 0.0, %v1446_v37 }
 0x9bd   :  { %v1360_v40 = vpop.f32.mrf.mxu2 }
 0x9be   :  { %v1854_v29 = vpop.eup %1853  ;;  %v1361_v11 = vadd.f32 %v2937_v30, %v1360_v40  ;;  %v1466_v31 = vmul.f32 1.442695, %v1454_v27  ;;  %v1878_v27 = vld [vmem:[%s3107_s0] sm:$0xff] }
 0x9bf   :  { %v1856_v38 = vpop.eup %1855  ;;  %v1477_v39 = vadd.f32 1.0, %v1854_v29 }
 0x9c0   :  { %v2970_v32 = vadd.f32 %v1417_v6, %v1361_v11  ;;  %v1487_v47 = vmul.f32 0.6931472, %v1856_v38  ;;  %1857 = vpow2.f32 %v1466_v31 }
 0x9c1   :  { %1859 = vlog2.f32 %v1477_v39 }
 0x9c2   :  { %v1447_v43 = vand.u32 2147483647, %v2970_v32  ;;  %v2974_v50 = vadd.f32 %v1487_v47, %v1436_v42  ;;  %v1439_v49 = vmax.f32 %v2970_v32, 0.0  ;;  %v1879_v42 = vld [vmem:[%s3107_s0 + $0x28] sm:$0xff] }
 0x9c3   :  { %v1420_v55 = vpop.f32.mrf.mxu3 }
 0x9c4   :  { %1534 = vrot.lane.b32.xlu1 %v2974_v50, %s1888_s12  ;;  %v1455_v8 = vsub.f32 0.0, %v1447_v43  ;;  %v1880_v43 = vld [vmem:[%s3107_s0 + $0x10] sm:$0xff] }
 0x9c5   :  { %v1363_v13 = vpop.f32.mrf.mxu2 }
 0x9c6   :  { %v1858_v10 = vpop.eup %1857  ;;  %v1364_v9 = vadd.f32 %v2937_v30, %v1363_v13  ;;  %v1468_v44 = vmul.f32 1.442695, %v1455_v8 }
 0x9c7   :  { %v1860_v7 = vpop.eup %1859  ;;  %v1478_v33 = vadd.f32 1.0, %v1858_v10  ;;  %v1881_v10 = vld [vmem:[%s3107_s0 + $0x18] sm:$0xff] }
 0x9c8   :  { %v2979_v54 = vadd.f32 %v1420_v55, %v1364_v9  ;;  %v1489_v53 = vmul.f32 0.6931472, %v1860_v7  ;;  %1861 = vpow2.f32 %v1468_v44  ;;  %v1882_v7 = vld [vmem:[%s3107_s0 + $0x20] sm:$0xff] }
 0x9c9   :  { %1863 = vlog2.f32 %v1478_v33 }
 0x9ca   :  { %v1448_v61 = vand.u32 2147483647, %v2979_v54  ;;  %v2983_v18 = vadd.f32 %v1489_v53, %v1437_v60  ;;  %v1440_v59 = vmax.f32 %v2979_v54, 0.0  ;;  %v1883_v60 = vld [vmem:[%s3107_s0 + $0x30] sm:$0xff] }
 0x9cc   :  { %1536 = vrot.lane.b32.xlu1 %v2983_v18, %s1888_s12  ;;  %v1456_v24 = vsub.f32 0.0, %v1448_v61  ;;  %v1506_v61 = vsub.f32 %v2956_v23, %v2940_v46  ;;  %v54_v23 = vld [vmem:[%s3107_s0 + $0x38] sm:$0xff] }
 0x9ce   :  { %v1862_v56 = vpop.eup %1861  ;;  %v1470_v20 = vmul.f32 1.442695, %v1456_v24  ;;  %v1514_v24 = vmul.f32 %v1878_v27, %v1506_v61 }
 0x9cf   :  { %v1864_v26 = vpop.eup %1863  ;;  %v1479_v62 = vadd.f32 1.0, %v1862_v56 }
 0x9d0   :  { %v1491_v35 = vmul.f32 0.6931472, %v1864_v26  ;;  %1865 = vpow2.f32 %v1470_v20 }
 0x9d1   :  { %1867 = vlog2.f32 %v1479_v62  ;;  %v1507_v62 = vsub.f32 %v2965_v15, %v2944_v63 }
 0x9d2   :  { %v2988_v2 = vadd.f32 %v1491_v35, %v1438_v34 }
 0x9d3   :  { %v1515_v34 = vmul.f32 %v1877_v17, %v1507_v62 }
 0x9d4   :  { %1538 = vrot.lane.b32.xlu1 %v2988_v2, %s1888_s12 }
 0x9d6   :  { %v1866_v41 = vpop.eup %1865 }
 0x9d7   :  { %v1868_v48 = vpop.eup %1867  ;;  %v1480_v45 = vadd.f32 1.0, %v1866_v41 }
 0x9d8   :  { %v1493_v51 = vmul.f32 0.6931472, %v1868_v48 }
 0x9d9   :  { %1869 = vlog2.f32 %v1480_v45  ;;  %v1508_v45 = vsub.f32 %v2974_v50, %v2948_v28 }
 0x9da   :  { %v2993_v52 = vadd.f32 %v1493_v51, %v1439_v49 }
 0x9dc   :  { %1540 = vrot.lane.b32.xlu2 %v2993_v52, %s1888_s12  ;;  %v1511_v15 = vsub.f32 %v2993_v52, %v2970_v32 }
 0x9df   :  { %v1870_v58 = vpop.eup %1869 }
 0x9e0   :  { %v1495_v36 = vmul.f32 0.6931472, %v1870_v58 }
 0x9e2   :  { %v2998_v19 = vadd.f32 %v1495_v36, %v1440_v59  ;;  %v1516_v59 = vmul.f32 %v1880_v43, %v1508_v45 }
 0x9e4   :  { %1542 = vrot.lane.b32.xlu1 %v2998_v19, %s1888_s12 }
 0xa10   :  { %v1366_v21 = vpop.f32.mrf.mxu2 }
 0xa11   :  { %v1367_v25 = vadd.f32 %v2937_v30, %v1366_v21  ;;  %v1510_v21 = vsub.f32 %v2988_v2, %v2961_v5  ;;  %v1512_v2 = vsub.f32 %v2998_v19, %v2979_v54 }
 0xa15   :  { %v1423_v14 = vpop.f32.mrf.mxu3 }
 0xa16   :  { %v3003_v57 = vadd.f32 %v1423_v14, %v1367_v25  ;;  %v1533_v0 = vpop.permute.xlu2 %1532  ;;  %v1519_v25 = vmul.f32 %v1879_v42, %v1511_v15 }
 0xa17   :  { %v1555_v16 = vmul.f32 %v1877_v17, %v1533_v0 }
 0xa18   :  { %v1449_v3 = vand.u32 2147483647, %v3003_v57  ;;  %v1441_v29 = vmax.f32 %v3003_v57, 0.0 }
 0xa19   :  { %1572 = vrot.lane.b32.xlu1 %v1555_v16, %s1889_s25  ;;  %v1509_v16 = vsub.f32 %v2983_v18, %v2953_v1  ;;  %v1610_v18 = vlaneseq }
 0xa1a   :  { %v1457_v4 = vsub.f32 0.0, %v1449_v3  ;;  %v1518_v3 = vmul.f32 %v1882_v7, %v1510_v21 }
 0xa1c   :  { %v1472_v22 = vmul.f32 1.442695, %v1457_v4 }
 0xa1e   :  { %1871 = vpow2.f32 %v1472_v22 }
 0xa24   :  { %v1872_v12 = vpop.eup %1871 }
 0xa25   :  { %v1481_v37 = vadd.f32 1.0, %v1872_v12  ;;  %v1517_v12 = vmul.f32 %v1881_v10, %v1509_v16 }
 0xa26   :  { %v1531_v30 = vpop.permute.xlu1 %1530 }
 0xa27   :  { %v1554_v6 = vmul.f32 %v1878_v27, %v1531_v30  ;;  %1873 = vlog2.f32 %v1481_v37 }
 0xa29   :  { %1570 = vrot.lane.b32.xlu2 %v1554_v6, %s1889_s25  ;;  %v1520_v6 = vmul.f32 %v1883_v60, %v1512_v2 }
 0xa2d   :  { %v1874_v40 = vpop.eup %1873 }
 0xa2e   :  { %v1497_v11 = vmul.f32 0.6931472, %v1874_v40 }
 0xa30   :  { %v3015_v31 = vadd.f32 %v1497_v11, %v1441_v29 }
 0xa32   :  { %1544 = vrot.lane.b32.xlu0 %v3015_v31, %s1888_s12  ;;  %v1513_v19 = vsub.f32 %v3015_v31, %v3003_v57 }
 0xa36   :  { %v1541_v38 = vpop.permute.xlu2 %1540  ;;  %v1535_v39 = vpop.permute.xlu1 %1534 }
 0xa37   :  { %v1559_v47 = vmul.f32 %v1879_v42, %v1541_v38  ;;  %v1556_v8 = vmul.f32 %v1880_v43, %v1535_v39  ;;  %v1611_v38 = vand.u32 127, %v1610_v18 }
 0xa39   :  { %1574 = vrot.lane.b32.xlu2 %v1556_v8, %s1889_s25  ;;  %vm1612_vm2 = vcmp.eq.s32.totalorder %v1611_v38, 0 }
 0xa3a   :  { %1580 = vrot.lane.b32.xlu0 %v1559_v47, %s1889_s25  ;;  %v1521_v47 = vmul.f32 %v1513_v19, %v54_v23 }
 0xa3e   :  { %v1537_v13 = vpop.permute.xlu1 %1536 }
 0xa3f   :  { %v1557_v9 = vmul.f32 %v1881_v10, %v1537_v13 }
 0xa41   :  { %1576 = vrot.lane.b32.xlu1 %v1557_v9, %s1889_s25 }
 0xa46   :  { %v1539_v44 = vpop.permute.xlu1 %1538 }
 0xa47   :  { %v1558_v55 = vmul.f32 %v1882_v7, %v1539_v44 }
 0xa49   :  { %1578 = vrot.lane.b32.xlu2 %v1558_v55, %s1889_s25 }
 0xa56   :  { %v1543_v33 = vpop.permute.xlu1 %1542 }
 0xa57   :  { %v1560_v53 = vmul.f32 %v1883_v60, %v1543_v33 }
 0xa59   :  { %1582 = vrot.lane.b32.xlu1 %v1560_v53, %s1889_s25 }
 0xa83   :  { %v1571_v56 = vpop.permute.xlu2 %1570 }
 0xa84   :  { %v1594_v20 = vadd.f32 %v1571_v56, %v1514_v24 }
 0xa86   :  { %v1602_v26 = vsub.f32 0.0, %v1594_v20 }
 0xa88   :  { %1615 = vperm.xlu0 %1780, %v1602_v26  }
 0xa8b   :  { %v1573_v35 = vpop.permute.xlu1 %1572 }
 0xa8c   :  { %v1595_v41 = vadd.f32 %v1573_v35, %v1515_v34 }
 0xa8e   :  { %v1603_v48 = vsub.f32 0.0, %v1595_v41 }
 0xa90   :  { %1620 = vperm.xlu1 %1781, %v1603_v48  }
 0xa93   :  { %v1575_v58 = vpop.permute.xlu2 %1574 }
 0xa94   :  { %v1596_v36 = vadd.f32 %v1575_v58, %v1516_v59 }
 0xa96   :  { %v1604_v50 = vsub.f32 0.0, %v1596_v36 }
 0xaa3   :  { %v1579_v17 = vpop.permute.xlu2 %1578 }
 0xaa4   :  { %v1545_v49 = vpop.permute.xlu0 %1544  ;;  %v1598_v22 = vadd.f32 %v1579_v17, %v1518_v3 }
 0xaa5   :  { %v1561_v51 = vmul.f32 %v1545_v49, %v54_v23 }
 0xaa6   :  { %v1606_v30 = vsub.f32 0.0, %v1598_v22 }
 0xaa7   :  { %1584 = vrot.lane.b32.xlu2 %v1561_v51, %s1889_s25 }
 0xaac   :  { %v1581_v14 = vpop.permute.xlu0 %1580 }
 0xaad   :  { %v1599_v0 = vadd.f32 %v1581_v14, %v1519_v25 }
 0xaaf   :  { %v1607_v4 = vsub.f32 0.0, %v1599_v0  ;;  %1625 = vperm.xlu2 %1776, %v1604_v50  }
 0xab1   :  { %1640 = vperm.xlu0 %1780, %v1607_v4  }
 0xab3   :  { %v1577_v37 = vpop.permute.xlu1 %1576 }
 0xab4   :  { %v1597_v52 = vadd.f32 %v1577_v37, %v1517_v12 }
 0xab6   :  { %v1605_v27 = vsub.f32 0.0, %v1597_v52 }
 0xab7   :  { %1635 = vperm.xlu2 %1776, %v1606_v30  }
 0xab8   :  { %1630 = vperm.xlu1 %1781, %v1605_v27  }
 0xacb   :  { %v1583_v40 = vpop.permute.xlu1 %1582 }
 0xacc   :  { %v1600_v29 = vadd.f32 %v1583_v40, %v1520_v6 }
 0xace   :  { %v1608_v11 = vsub.f32 0.0, %v1600_v29 }
 0xad0   :  { %1645 = vperm.xlu1 %1781, %v1608_v11  }
 0xafa   :  { %v1616_v39 = vpop.permute.xlu0 %1615 }
 0xafb   :  { %v1653_v42 = vsel %vm1612_vm2, %v1616_v39, %v2940_v46 }
 0xafc   :  { %1662 = vst.msk [vmem:[%s3121_s14] sm:$0xff] %vm1661_vm3, %v1653_v42 }
 0xb01   :  { %v1585_v43 = vpop.permute.xlu2 %1584 }
 0xb02   :  { %v1601_v8 = vadd.f32 %v1585_v43, %v1521_v47  ;;  %v1621_v13 = vpop.permute.xlu1 %1620 }
 0xb03   :  { %v1654_v10 = vsel %vm1612_vm2, %v1621_v13, %v2944_v63 }
 0xb04   :  { %v1609_v9 = vsub.f32 0.0, %v1601_v8  ;;  %1663 = vst.msk [vmem:[%s3121_s14 + $0x8] sm:$0xff] %vm1661_vm3, %v1654_v10 }
 0xb06   :  { %1650 = vperm.xlu2 %1776, %v1609_v9  }
 0xb09   :  { %v1626_v46 = vpop.permute.xlu2 %1625 }
 0xb0a   :  { %v1655_v44 = vsel %vm1612_vm2, %v1626_v46, %v2948_v28 }
 0xb0b   :  { %1664 = vst.msk [vmem:[%s3121_s14 + $0x10] sm:$0xff] %vm1661_vm3, %v1655_v44 }
 0xb11   :  { %v1636_v31 = vpop.permute.xlu2 %1635 }
 0xb12   :  { %v1657_v63 = vsel %vm1612_vm2, %v1636_v31, %v2961_v5 }
 0xb13   :  { %1666 = vst.msk [vmem:[%s3121_s14 + $0x20] sm:$0xff] %vm1661_vm3, %v1657_v63 }
 0xb23   :  { %v1641_v7 = vpop.permute.xlu0 %1640 }
 0xb24   :  { %v1658_v55 = vsel %vm1612_vm2, %v1641_v7, %v2970_v32 }
 0xb25   :  { %1667 = vst.msk [vmem:[%s3121_s14 + $0x28] sm:$0xff] %vm1661_vm3, %v1658_v55 }
 0xb2a   :  { %v1631_v28 = vpop.permute.xlu1 %1630 }
 0xb2b   :  { %v1656_v33 = vsel %vm1612_vm2, %v1631_v28, %v2953_v1 }
 0xb2c   :  { %1665 = vst.msk [vmem:[%s3121_s14 + $0x18] sm:$0xff] %vm1661_vm3, %v1656_v33 }
 0xb42   :  { %v1646_v5 = vpop.permute.xlu1 %1645 }
 0xb43   :  { %v1659_v60 = vsel %vm1612_vm2, %v1646_v5, %v2979_v54 }
 0xb44   :  { %1668 = vst.msk [vmem:[%s3121_s14 + $0x30] sm:$0xff] %vm1661_vm3, %v1659_v60 }
 0xb60   :  { %v1651_v32 = vpop.permute.xlu2 %1650 }
 0xb61   :  { %v1660_v53 = vsel %vm1612_vm2, %v1651_v32, %v3003_v57 }
 0xb62   :  { %1669 = vst.msk [vmem:[%s3121_s14 + $0x38] sm:$0xff] %vm1661_vm3, %v1660_v53 }

</bundles_post_ra>
